<compile_context>
chip_gen: v5e
topology: v5e:2x2
jax: 0.10.0
libtpu: 0.0.40
codegen_flags: <defaults>
</compile_context>

<pallas_src>
import functools

import jax
import jax.numpy as jnp
from jax import lax
from jax.experimental import pallas as pl
from jax.experimental.pallas import tpu as pltpu


# ----------------------------------------------------------------------------
# Fused MBConv kernel
# ----------------------------------------------------------------------------

def _fused_mbconv_kernel(*refs, kk, stride, pad, has_expand, ho, wo,
                         rows_per_block):
    """One grid step = one image x one tile of the expanded channel dim."""
    if has_expand:
        (x_ref, we_ref, be_ref, wd_ref, bd_ref, wpt_ref, bp_ref,
         o_ref, stage_ref, dw_ref, acc_ref) = refs
    else:
        (x_ref, wd_ref, bd_ref, wpt_ref, bp_ref,
         o_ref, stage_ref, dw_ref, acc_ref) = refs

    H, W = x_ref.shape[1], x_ref.shape[2]
    Hp, Wp, CT = stage_ref.shape            # padded staging buffer, channel tile
    Ho, Wo = ho, wo

    c_idx = pl.program_id(1)
    n_ct = pl.num_programs(1)

    # ---- init the projection accumulator at the start of each image's
    #      channel-reduction loop.
    @pl.when(c_idx == 0)
    def _():
        acc_ref[...] = jnp.zeros_like(acc_ref)

    # ---- zero the spatial-padding border once per image (it is never
    #      overwritten by the interior writes, and the channel-tile axis runs
    #      serially per image on one core).
    if pad > 0:
        @pl.when(c_idx == 0)
        def _():
            stage_ref[0:pad, :, :] = jnp.zeros((pad, Wp, CT), jnp.float32)
            stage_ref[Hp - pad:Hp, :, :] = jnp.zeros((pad, Wp, CT), jnp.float32)
            stage_ref[:, 0:pad, :] = jnp.zeros((Hp, pad, CT), jnp.float32)
            stage_ref[:, Wp - pad:Wp, :] = jnp.zeros((Hp, pad, CT), jnp.float32)

    # ---- stage 1: expand 1x1 conv + ReLU6 as a single flattened matmul
    #      (M = H*W fills the MXU), written into the padded VMEM staging
    #      buffer; the expanded activation never touches HBM.
    if has_expand:
        we = we_ref[...]                                   # (Cin, CT)
        be = be_ref[...].astype(jnp.float32)               # (1, CT)
        xin = x_ref[0].reshape(H * W, x_ref.shape[3])      # (H*W, Cin)
        e = jnp.dot(xin, we, preferred_element_type=jnp.float32) + be
        e = jnp.clip(e, 0.0, 6.0)
        stage_ref[pad:pad + H, pad:pad + W, :] = e.reshape(H, W, CT)
    else:
        stage_ref[pad:pad + H, pad:pad + W, :] = x_ref[0].astype(jnp.float32)

    # ---- stage 2: depthwise kxk conv + bias + ReLU6 into a flat (Ho*Wo, CT)
    #      VMEM buffer, in row-blocks.  Tap vectors / bias broadcast hoisted.
    wd = wd_ref[...].astype(jnp.float32)                   # (k, k, CT)
    bd = bd_ref[...].astype(jnp.float32).reshape(1, 1, CT)
    taps = [[wd[kh:kh + 1, kw:kw + 1, :] for kw in range(kk)]
            for kh in range(kk)]                           # (1,1,CT) each

    def do_rows(row0, rblk):
        acc = None
        for kh in range(kk):
            for kw in range(kk):
                if stride == 1:
                    patch = stage_ref[pl.ds(row0 + kh, rblk), kw:kw + Wo, :]
                else:
                    # TODO(synk): stride>1 strided sublane gathers go through
                    # the XLU; de-interleave the staging buffer instead.
                    patch = stage_ref[pl.ds(row0 * stride + kh, rblk,
                                            stride=stride),
                                      pl.ds(kw, Wo, stride=stride), :]
                term = patch * taps[kh][kw]
                acc = term if acc is None else acc + term
        rows = jnp.clip(acc + bd, 0.0, 6.0)                # (rblk, Wo, CT)
        dw_ref[pl.ds(row0 * Wo, rblk * Wo), :] = rows.reshape(rblk * Wo, CT)

    n_full = Ho // rows_per_block
    tail = Ho - n_full * rows_per_block
    if n_full <= 8:
        # small trip-count: static unroll with static offsets
        for b in range(n_full):
            do_rows(b * rows_per_block, rows_per_block)
    else:
        # large trip-count: compact loop body, bounded vreg live ranges
        def body(b, carry):
            do_rows(b * rows_per_block, rows_per_block)
            return carry
        lax.fori_loop(0, n_full, body, 0)
    if tail > 0:
        do_rows(n_full * rows_per_block, tail)

    # ---- stage 3: 1x1 projection — one batched matmul per channel tile.
    #      Computed as (Cout, CT) x (Ho*Wo, CT)^T so the accumulator and the
    #      HBM writeback are lane-dense along the spatial axis (NCHW output).
    prj = lax.dot_general(
        wpt_ref[...], dw_ref[...],
        dimension_numbers=(((1,), (1,)), ((), ())),
        preferred_element_type=jnp.float32)                # (Cout, Ho*Wo)
    acc_ref[...] += prj

    # ---- finalize: add projection bias (no activation) and store once.
    @pl.when(c_idx == n_ct - 1)
    def _():
        bp = bp_ref[...].astype(jnp.float32)               # (Cout, 1)
        o_ref[0, :, :] = (acc_ref[...] + bp).astype(o_ref.dtype)


# ----------------------------------------------------------------------------
# Wrapper around pallas_call
# ----------------------------------------------------------------------------

_VMEM_BUDGET = 24 * 1024 * 1024   # conservative across v5e/v6e/v7x


def _pick_channel_tile(c, hp, wpad, ho, wo, cin, cout):
    """Lane-aligned divisor of the expanded width that fits the VMEM budget;
    falls back to the full width (common MBConv widths like 144/240/576 have
    no 128-multiple divisor)."""
    def per_tile_bytes(t):
        stage = hp * wpad * t * 4
        dwbuf = ho * wo * t * 4
        acc = cout * ho * wo * 4
        wts = 2 * 4 * t * (cin + 9 + cout + 4)   # double-buffered weight tiles
        return stage + dwbuf + acc + wts

    cands = [t for t in range(128, c, 128)
             if c % t == 0 and per_tile_bytes(t) <= _VMEM_BUDGET]
    if cands:
        return max(cands)
    return c


def fused_mb_inverted_conv(x_nhwc, params, *, kernel_size, stride, padding,
                           inverted_bottleneck):
    N, H, W, Cin = x_nhwc.shape
    k = kernel_size
    Hp, Wp = H + 2 * padding, W + 2 * padding
    Ho = (Hp - k) // stride + 1
    Wo = (Wp - k) // stride + 1

    w_dw, b_dw = params["w_dw"], params["b_dw"].reshape(1, -1)
    w_pj = params["w_proj"]
    C = w_dw.shape[-1]                    # expanded (depthwise) channel count
    Cout = w_pj.shape[1]
    w_pjt = jnp.transpose(w_pj, (1, 0))   # (Cout, C): lane-dense projection
    b_pj = params["b_proj"].reshape(-1, 1)

    CT = _pick_channel_tile(C, Hp, Wp, Ho, Wo, Cin, Cout)
    n_ct = C // CT
    rows_per_block = max(1, min(Ho, -(-128 // Wo)))   # ~128 output px per block

    kernel = functools.partial(_fused_mbconv_kernel, kk=k, stride=stride,
                               pad=padding, has_expand=inverted_bottleneck,
                               ho=Ho, wo=Wo, rows_per_block=rows_per_block)

    if inverted_bottleneck:
        w_ex, b_ex = params["w_exp"], params["b_exp"].reshape(1, -1)
        in_specs = [
            pl.BlockSpec((1, H, W, Cin), lambda n, c: (n, 0, 0, 0)),
            pl.BlockSpec((Cin, CT), lambda n, c: (0, c)),
            pl.BlockSpec((1, CT), lambda n, c: (0, c)),
            pl.BlockSpec((k, k, CT), lambda n, c: (0, 0, c)),
            pl.BlockSpec((1, CT), lambda n, c: (0, c)),
            pl.BlockSpec((Cout, CT), lambda n, c: (0, c)),
            pl.BlockSpec((Cout, 1), lambda n, c: (0, 0)),
        ]
        args = (x_nhwc, w_ex, b_ex, w_dw, b_dw, w_pjt, b_pj)
        flops = 2 * N * H * W * Cin * C
    else:
        in_specs = [
            pl.BlockSpec((1, H, W, CT), lambda n, c: (n, 0, 0, c)),
            pl.BlockSpec((k, k, CT), lambda n, c: (0, 0, c)),
            pl.BlockSpec((1, CT), lambda n, c: (0, c)),
            pl.BlockSpec((Cout, CT), lambda n, c: (0, c)),
            pl.BlockSpec((Cout, 1), lambda n, c: (0, 0)),
        ]
        args = (x_nhwc, w_dw, b_dw, w_pjt, b_pj)
        flops = 0
    flops += 2 * N * Ho * Wo * (k * k * C + C * Cout)

    scratch_bytes = 4 * (Hp * Wp * CT + Ho * Wo * CT + Cout * Ho * Wo)
    io_bytes = 4 * (H * W * max(Cin, CT) + Ho * Wo * Cout
                    + CT * (Cin + k * k + Cout + 4))
    vmem_limit = int(min(64 * 1024 * 1024,
                         max(32 * 1024 * 1024,
                             scratch_bytes + 2 * io_bytes + (4 << 20))))
    # weights are re-DMA'd once per image -> count them N times
    bytes_accessed = 4 * (int(x_nhwc.size) + N * Ho * Wo * Cout
                          + N * sum(int(p.size) for p in params.values()))

    y = pl.pallas_call(
        kernel,
        out_shape=jax.ShapeDtypeStruct((N, Cout, Ho * Wo), x_nhwc.dtype),
        grid=(N, n_ct),
        in_specs=in_specs,
        out_specs=pl.BlockSpec((1, Cout, Ho * Wo), lambda n, c: (n, 0, 0)),
        scratch_shapes=[
            pltpu.VMEM((Hp, Wp, CT), jnp.float32),     # padded expand staging
            pltpu.VMEM((Ho * Wo, CT), jnp.float32),    # depthwise output rows
            pltpu.VMEM((Cout, Ho * Wo), jnp.float32),  # lane-dense proj accum
        ],
        compiler_params=pltpu.CompilerParams(
            dimension_semantics=("parallel", "arbitrary"),
            vmem_limit_bytes=vmem_limit),
        cost_estimate=pl.CostEstimate(flops=int(flops), transcendentals=0,
                                      bytes_accessed=int(bytes_accessed)),
    )(*args)
    return y.reshape(N, Cout, Ho, Wo)     # lane-dense output is already NCHW


# ----------------------------------------------------------------------------
# MBInvertedConvLayer: params + forward (NCHW in / NCHW out)
# ----------------------------------------------------------------------------

def init_mb_inverted_conv(key, in_channels, out_channels, out_channels_inv,
                          kernel_size, inverted_bottleneck, dtype=jnp.float32):
    ks = jax.random.split(key, 6)
    p = {}
    if inverted_bottleneck:
        p["w_exp"] = (jax.random.normal(ks[0], (in_channels, out_channels_inv),
                                        dtype) * 0.1)
        p["b_exp"] = jax.random.normal(ks[1], (out_channels_inv,), dtype) * 0.1
        p["w_dw"] = (jax.random.normal(ks[2],
                                       (kernel_size, kernel_size, out_channels_inv),
                                       dtype) * 0.1)
        p["b_dw"] = jax.random.normal(ks[3], (out_channels_inv,), dtype) * 0.1
        p["w_proj"] = (jax.random.normal(ks[4], (out_channels_inv, out_channels),
                                         dtype) * 0.1)
        p["b_proj"] = jax.random.normal(ks[5], (out_channels,), dtype) * 0.1
    else:
        p["w_dw"] = (jax.random.normal(ks[0],
                                       (kernel_size, kernel_size, in_channels),
                                       dtype) * 0.1)
        p["b_dw"] = jax.random.normal(ks[1], (in_channels,), dtype) * 0.1
        p["w_proj"] = (jax.random.normal(ks[2], (in_channels, out_channels),
                                         dtype) * 0.1)
        p["b_proj"] = jax.random.normal(ks[3], (out_channels,), dtype) * 0.1
    return p


def mb_inverted_conv_forward(params, x_nchw, *, stride, padding,
                             inverted_bottleneck):
    """Forward pass matching MBInvertedConvLayer. Input/output: NCHW."""
    kernel_size = params["w_dw"].shape[0]
    x = jnp.transpose(x_nchw, (0, 2, 3, 1))            # NCHW -> NHWC
    return fused_mb_inverted_conv(x, params, kernel_size=kernel_size,
                                  stride=stride, padding=padding,
                                  inverted_bottleneck=inverted_bottleneck)


# ----------------------------------------------------------------------------
# Pure-JAX reference (lax.conv) for correctness checking
# ----------------------------------------------------------------------------

def _ref_conv(x, w_oihw, b, stride, padding, groups, act):
    y = lax.conv_general_dilated(
        x, w_oihw, window_strides=(stride, stride),
        padding=((padding, padding), (padding, padding)),
        dimension_numbers=("NCHW", "OIHW", "NCHW"),
        feature_group_count=groups)
    y = y + b.reshape(1, -1, 1, 1)
    if act:
        y = jnp.clip(y, 0.0, 6.0)
    return y


def reference_forward(params, x_nchw, *, stride, padding, inverted_bottleneck):
    x = x_nchw
    if inverted_bottleneck:
        w = jnp.transpose(params["w_exp"], (1, 0))[:, :, None, None]   # OIHW
        x = _ref_conv(x, w, params["b_exp"], 1, 0, 1, True)
    c = params["w_dw"].shape[-1]
    w_dw = jnp.transpose(params["w_dw"], (2, 0, 1))[:, None, :, :]     # (C,1,k,k)
    x = _ref_conv(x, w_dw, params["b_dw"], stride, padding, c, True)
    w_p = jnp.transpose(params["w_proj"], (1, 0))[:, :, None, None]    # OIHW
    x = _ref_conv(x, w_p, params["b_proj"], 1, 0, 1, False)
    return x


# ----------------------------------------------------------------------------
# Main
# ----------------------------------------------------------------------------

if __name__ == "__main__":
    key = jax.random.PRNGKey(0)
    kx, kp1, kp2 = jax.random.split(key, 3)

    # small, MBConv-consistent shapes
    N, Cin, H, W = 2, 4, 16, 16
    Cout, Cinv = 8, 16
    ksize, stride, padding = 3, 1, 1

    x = jax.random.normal(kx, (N, Cin, H, W), jnp.float32)

    ok = True
    for inverted in (True, False):
        params = init_mb_inverted_conv(kp1 if inverted else kp2, Cin, Cout, Cinv,
                                       ksize, inverted)
        out = mb_inverted_conv_forward(params, x, stride=stride, padding=padding,
                                       inverted_bottleneck=inverted)
        out = jax.block_until_ready(out)
        ref = reference_forward(params, x, stride=stride, padding=padding,
                                inverted_bottleneck=inverted)
        ref = jax.block_until_ready(ref)
        assert out.shape == ref.shape, (out.shape, ref.shape)
        if not jnp.allclose(out, ref, atol=1e-4, rtol=1e-4):
            ok = False

    if ok:
        print("KERNEL_OK")
</pallas_src>

<mosaic_0001>
module attributes {stable_mosaic.version = 11 : i64} {
  func.func @_fused_mbconv_kernel(%arg0: i32, %arg1: i32, %arg2: memref<1x16x16x4xf32, #tpu.memory_space<vmem>>, %arg3: memref<4x16xf32, #tpu.memory_space<vmem>>, %arg4: memref<1x16xf32, #tpu.memory_space<vmem>>, %arg5: memref<3x3x16xf32, #tpu.memory_space<vmem>>, %arg6: memref<1x16xf32, #tpu.memory_space<vmem>>, %arg7: memref<8x16xf32, #tpu.memory_space<vmem>>, %arg8: memref<8x1xf32, #tpu.memory_space<vmem>>, %arg9: memref<1x8x256xf32, #tpu.memory_space<vmem>>, %arg10: memref<18x18x16xf32, #tpu.memory_space<vmem>>, %arg11: memref<256x16xf32, #tpu.memory_space<vmem>>, %arg12: memref<8x256xf32, #tpu.memory_space<vmem>>) attributes {dimension_semantics = [#tpu.dimension_semantics<parallel>, #tpu.dimension_semantics<arbitrary>], iteration_bounds = array<i64: 2, 1>, scalar_prefetch = 0 : i64, scratch_operands = 3 : i64, tpu.core_type = #tpu.core_type<tc>, window_params = [{transform_indices = @transform_0, window_bounds = array<i64: 1, 16, 16, 4>}, {transform_indices = @transform_1, window_bounds = array<i64: 4, 16>}, {transform_indices = @transform_2, window_bounds = array<i64: 1, 16>}, {transform_indices = @transform_3, window_bounds = array<i64: 3, 3, 16>}, {transform_indices = @transform_4, window_bounds = array<i64: 1, 16>}, {transform_indices = @transform_5, window_bounds = array<i64: 8, 16>}, {pipeline_mode = #tpu.pipeline_mode<synchronous>, transform_indices = @transform_6, window_bounds = array<i64: 8, 1>}, {transform_indices = @transform_7, window_bounds = array<i64: 1, 8, 256>}]} {
    %c0_i32 = arith.constant 0 : i32
    %0 = arith.cmpi eq, %arg1, %c0_i32 : i32
    %1 = arith.extui %0 : i1 to i32
    %c0_i32_0 = arith.constant 0 : i32
    %2 = arith.cmpi ne, %1, %c0_i32_0 : i32
    scf.if %2 {
      %cst_87 = arith.constant 0.000000e+00 : f32
      %127 = vector.broadcast %cst_87 : f32 to vector<8x256xf32>
      %c0_88 = arith.constant 0 : index
      %c0_89 = arith.constant 0 : index
      %128 = vector.load %arg12[%c0_88, %c0_89] : memref<8x256xf32, #tpu.memory_space<vmem>>, vector<8x256xf32>
      tpu.vector_store %arg12[%c0_88, %c0_89], %127 {strides = array<i32>} : memref<8x256xf32, #tpu.memory_space<vmem>>, vector<8x256xf32>,
    } else {
    }
    %c0_i32_1 = arith.constant 0 : i32
    %3 = arith.cmpi eq, %arg1, %c0_i32_1 : i32
    %4 = arith.extui %3 : i1 to i32
    %c0_i32_2 = arith.constant 0 : i32
    %5 = arith.cmpi ne, %4, %c0_i32_2 : i32
    scf.if %5 {
      %cst_87 = arith.constant 0.000000e+00 : f32
      %127 = vector.broadcast %cst_87 : f32 to vector<1x18x16xf32>
      %c0_88 = arith.constant 0 : index
      %c0_89 = arith.constant 0 : index
      %c0_90 = arith.constant 0 : index
      %128 = vector.load %arg10[%c0_88, %c0_89, %c0_90] : memref<18x18x16xf32, #tpu.memory_space<vmem>>, vector<1x18x16xf32>
      tpu.vector_store %arg10[%c0_88, %c0_89, %c0_90], %127 {strides = array<i32>} : memref<18x18x16xf32, #tpu.memory_space<vmem>>, vector<1x18x16xf32>,
      %cst_91 = arith.constant 0.000000e+00 : f32
      %129 = vector.broadcast %cst_91 : f32 to vector<1x18x16xf32>
      %c17 = arith.constant 17 : index
      %c0_92 = arith.constant 0 : index
      %c0_93 = arith.constant 0 : index
      %130 = vector.load %arg10[%c17, %c0_92, %c0_93] : memref<18x18x16xf32, #tpu.memory_space<vmem>>, vector<1x18x16xf32>
      tpu.vector_store %arg10[%c17, %c0_92, %c0_93], %129 {strides = array<i32>} : memref<18x18x16xf32, #tpu.memory_space<vmem>>, vector<1x18x16xf32>,
      %cst_94 = arith.constant 0.000000e+00 : f32
      %131 = vector.broadcast %cst_94 : f32 to vector<18x1x16xf32>
      %c0_95 = arith.constant 0 : index
      %c0_96 = arith.constant 0 : index
      %c0_97 = arith.constant 0 : index
      %132 = vector.load %arg10[%c0_95, %c0_96, %c0_97] : memref<18x18x16xf32, #tpu.memory_space<vmem>>, vector<18x1x16xf32>
      tpu.vector_store %arg10[%c0_95, %c0_96, %c0_97], %131 {strides = array<i32>} : memref<18x18x16xf32, #tpu.memory_space<vmem>>, vector<18x1x16xf32>,
      %cst_98 = arith.constant 0.000000e+00 : f32
      %133 = vector.broadcast %cst_98 : f32 to vector<18x1x16xf32>
      %c0_99 = arith.constant 0 : index
      %c17_100 = arith.constant 17 : index
      %c0_101 = arith.constant 0 : index
      %134 = vector.load %arg10[%c0_99, %c17_100, %c0_101] : memref<18x18x16xf32, #tpu.memory_space<vmem>>, vector<18x1x16xf32>
      tpu.vector_store %arg10[%c0_99, %c17_100, %c0_101], %133 {strides = array<i32>} : memref<18x18x16xf32, #tpu.memory_space<vmem>>, vector<18x1x16xf32>,
    } else {
    }
    %c0 = arith.constant 0 : index
    %c0_3 = arith.constant 0 : index
    %6 = vector.load %arg3[%c0, %c0_3] : memref<4x16xf32, #tpu.memory_space<vmem>>, vector<4x16xf32>
    %c0_4 = arith.constant 0 : index
    %c0_5 = arith.constant 0 : index
    %7 = vector.load %arg4[%c0_4, %c0_5] : memref<1x16xf32, #tpu.memory_space<vmem>>, vector<1x16xf32>
    %c0_6 = arith.constant 0 : index
    %c0_7 = arith.constant 0 : index
    %c0_8 = arith.constant 0 : index
    %c0_9 = arith.constant 0 : index
    %8 = vector.load %arg2[%c0_6, %c0_7, %c0_8, %c0_9] : memref<1x16x16x4xf32, #tpu.memory_space<vmem>>, vector<1x16x16x4xf32>
    %9 = vector.shape_cast %8 : vector<1x16x16x4xf32> to vector<16x16x4xf32>
    %10 = vector.shape_cast %9 : vector<16x16x4xf32> to vector<256x4xf32>
    %cst = arith.constant dense<0.000000e+00> : vector<256x16xf32>
    %11 = tpu.matmul %10, %6, %cst {dimension_numbers = #tpu.dot_dimension_numbers<[1], [0], [0], [1], [0, 0, 1, 1], [], []>} : vector<256x4xf32>, vector<4x16xf32>, vector<256x16xf32> -> vector<256x16xf32>
    %12 = vector.broadcast %7 : vector<1x16xf32> to vector<256x16xf32>
    %13 = arith.addf %11, %12 : vector<256x16xf32>
    %cst_10 = arith.constant 0.000000e+00 : f32
    %cst_11 = arith.constant 6.000000e+00 : f32
    %14 = vector.broadcast %cst_10 : f32 to vector<256x16xf32>
    %15 = arith.maximumf %14, %13 : vector<256x16xf32>
    %16 = vector.broadcast %cst_11 : f32 to vector<256x16xf32>
    %17 = arith.minimumf %16, %15 : vector<256x16xf32>
    %18 = vector.shape_cast %17 : vector<256x16xf32> to vector<16x16x16xf32>
    %c1 = arith.constant 1 : index
    %c1_12 = arith.constant 1 : index
    %c0_13 = arith.constant 0 : index
    %19 = vector.load %arg10[%c1, %c1_12, %c0_13] : memref<18x18x16xf32, #tpu.memory_space<vmem>>, vector<16x16x16xf32>
    tpu.vector_store %arg10[%c1, %c1_12, %c0_13], %18 {strides = array<i32>} : memref<18x18x16xf32, #tpu.memory_space<vmem>>, vector<16x16x16xf32>,
    %c0_14 = arith.constant 0 : index
    %c0_15 = arith.constant 0 : index
    %c0_16 = arith.constant 0 : index
    %20 = vector.load %arg5[%c0_14, %c0_15, %c0_16] : memref<3x3x16xf32, #tpu.memory_space<vmem>>, vector<3x3x16xf32>
    %c0_17 = arith.constant 0 : index
    %c0_18 = arith.constant 0 : index
    %21 = vector.load %arg6[%c0_17, %c0_18] : memref<1x16xf32, #tpu.memory_space<vmem>>, vector<1x16xf32>
    %22 = vector.shape_cast %21 : vector<1x16xf32> to vector<1x1x16xf32>
    %23 = vector.extract_strided_slice %20 {offsets = [0, 0, 0], sizes = [1, 1, 16], strides = [1, 1, 1]} : vector<3x3x16xf32> to vector<1x1x16xf32>
    %24 = vector.extract_strided_slice %20 {offsets = [0, 1, 0], sizes = [1, 1, 16], strides = [1, 1, 1]} : vector<3x3x16xf32> to vector<1x1x16xf32>
    %25 = vector.extract_strided_slice %20 {offsets = [0, 2, 0], sizes = [1, 1, 16], strides = [1, 1, 1]} : vector<3x3x16xf32> to vector<1x1x16xf32>
    %26 = vector.extract_strided_slice %20 {offsets = [1, 0, 0], sizes = [1, 1, 16], strides = [1, 1, 1]} : vector<3x3x16xf32> to vector<1x1x16xf32>
    %27 = vector.extract_strided_slice %20 {offsets = [1, 1, 0], sizes = [1, 1, 16], strides = [1, 1, 1]} : vector<3x3x16xf32> to vector<1x1x16xf32>
    %28 = vector.extract_strided_slice %20 {offsets = [1, 2, 0], sizes = [1, 1, 16], strides = [1, 1, 1]} : vector<3x3x16xf32> to vector<1x1x16xf32>
    %29 = vector.extract_strided_slice %20 {offsets = [2, 0, 0], sizes = [1, 1, 16], strides = [1, 1, 1]} : vector<3x3x16xf32> to vector<1x1x16xf32>
    %30 = vector.extract_strided_slice %20 {offsets = [2, 1, 0], sizes = [1, 1, 16], strides = [1, 1, 1]} : vector<3x3x16xf32> to vector<1x1x16xf32>
    %31 = vector.extract_strided_slice %20 {offsets = [2, 2, 0], sizes = [1, 1, 16], strides = [1, 1, 1]} : vector<3x3x16xf32> to vector<1x1x16xf32>
    %c0_19 = arith.constant 0 : index
    %c0_20 = arith.constant 0 : index
    %c0_21 = arith.constant 0 : index
    %32 = vector.load %arg10[%c0_19, %c0_20, %c0_21] : memref<18x18x16xf32, #tpu.memory_space<vmem>>, vector<8x16x16xf32>
    %33 = vector.broadcast %23 : vector<1x1x16xf32> to vector<8x16x16xf32>
    %34 = arith.mulf %32, %33 : vector<8x16x16xf32>
    %c0_22 = arith.constant 0 : index
    %c1_23 = arith.constant 1 : index
    %c0_24 = arith.constant 0 : index
    %35 = vector.load %arg10[%c0_22, %c1_23, %c0_24] : memref<18x18x16xf32, #tpu.memory_space<vmem>>, vector<8x16x16xf32>
    %36 = vector.broadcast %24 : vector<1x1x16xf32> to vector<8x16x16xf32>
    %37 = arith.mulf %35, %36 : vector<8x16x16xf32>
    %38 = arith.addf %34, %37 : vector<8x16x16xf32>
    %c0_25 = arith.constant 0 : index
    %c2 = arith.constant 2 : index
    %c0_26 = arith.constant 0 : index
    %39 = vector.load %arg10[%c0_25, %c2, %c0_26] : memref<18x18x16xf32, #tpu.memory_space<vmem>>, vector<8x16x16xf32>
    %40 = vector.broadcast %25 : vector<1x1x16xf32> to vector<8x16x16xf32>
    %41 = arith.mulf %39, %40 : vector<8x16x16xf32>
    %42 = arith.addf %38, %41 : vector<8x16x16xf32>
    %c1_27 = arith.constant 1 : index
    %c0_28 = arith.constant 0 : index
    %c0_29 = arith.constant 0 : index
    %43 = vector.load %arg10[%c1_27, %c0_28, %c0_29] : memref<18x18x16xf32, #tpu.memory_space<vmem>>, vector<8x16x16xf32>
    %44 = vector.broadcast %26 : vector<1x1x16xf32> to vector<8x16x16xf32>
    %45 = arith.mulf %43, %44 : vector<8x16x16xf32>
    %46 = arith.addf %42, %45 : vector<8x16x16xf32>
    %c1_30 = arith.constant 1 : index
    %c1_31 = arith.constant 1 : index
    %c0_32 = arith.constant 0 : index
    %47 = vector.load %arg10[%c1_30, %c1_31, %c0_32] : memref<18x18x16xf32, #tpu.memory_space<vmem>>, vector<8x16x16xf32>
    %48 = vector.broadcast %27 : vector<1x1x16xf32> to vector<8x16x16xf32>
    %49 = arith.mulf %47, %48 : vector<8x16x16xf32>
    %50 = arith.addf %46, %49 : vector<8x16x16xf32>
    %c1_33 = arith.constant 1 : index
    %c2_34 = arith.constant 2 : index
    %c0_35 = arith.constant 0 : index
    %51 = vector.load %arg10[%c1_33, %c2_34, %c0_35] : memref<18x18x16xf32, #tpu.memory_space<vmem>>, vector<8x16x16xf32>
    %52 = vector.broadcast %28 : vector<1x1x16xf32> to vector<8x16x16xf32>
    %53 = arith.mulf %51, %52 : vector<8x16x16xf32>
    %54 = arith.addf %50, %53 : vector<8x16x16xf32>
    %c2_36 = arith.constant 2 : index
    %c0_37 = arith.constant 0 : index
    %c0_38 = arith.constant 0 : index
    %55 = vector.load %arg10[%c2_36, %c0_37, %c0_38] : memref<18x18x16xf32, #tpu.memory_space<vmem>>, vector<8x16x16xf32>
    %56 = vector.broadcast %29 : vector<1x1x16xf32> to vector<8x16x16xf32>
    %57 = arith.mulf %55, %56 : vector<8x16x16xf32>
    %58 = arith.addf %54, %57 : vector<8x16x16xf32>
    %c2_39 = arith.constant 2 : index
    %c1_40 = arith.constant 1 : index
    %c0_41 = arith.constant 0 : index
    %59 = vector.load %arg10[%c2_39, %c1_40, %c0_41] : memref<18x18x16xf32, #tpu.memory_space<vmem>>, vector<8x16x16xf32>
    %60 = vector.broadcast %30 : vector<1x1x16xf32> to vector<8x16x16xf32>
    %61 = arith.mulf %59, %60 : vector<8x16x16xf32>
    %62 = arith.addf %58, %61 : vector<8x16x16xf32>
    %c2_42 = arith.constant 2 : index
    %c2_43 = arith.constant 2 : index
    %c0_44 = arith.constant 0 : index
    %63 = vector.load %arg10[%c2_42, %c2_43, %c0_44] : memref<18x18x16xf32, #tpu.memory_space<vmem>>, vector<8x16x16xf32>
    %64 = vector.broadcast %31 : vector<1x1x16xf32> to vector<8x16x16xf32>
    %65 = arith.mulf %63, %64 : vector<8x16x16xf32>
    %66 = arith.addf %62, %65 : vector<8x16x16xf32>
    %67 = vector.broadcast %22 : vector<1x1x16xf32> to vector<8x16x16xf32>
    %68 = arith.addf %66, %67 : vector<8x16x16xf32>
    %cst_45 = arith.constant 0.000000e+00 : f32
    %cst_46 = arith.constant 6.000000e+00 : f32
    %69 = vector.broadcast %cst_45 : f32 to vector<8x16x16xf32>
    %70 = arith.maximumf %69, %68 : vector<8x16x16xf32>
    %71 = vector.broadcast %cst_46 : f32 to vector<8x16x16xf32>
    %72 = arith.minimumf %71, %70 : vector<8x16x16xf32>
    %73 = vector.shape_cast %72 : vector<8x16x16xf32> to vector<128x16xf32>
    %c0_47 = arith.constant 0 : index
    %c0_48 = arith.constant 0 : index
    %74 = vector.load %arg11[%c0_47, %c0_48] : memref<256x16xf32, #tpu.memory_space<vmem>>, vector<128x16xf32>
    tpu.vector_store %arg11[%c0_47, %c0_48], %73 {strides = array<i32>} : memref<256x16xf32, #tpu.memory_space<vmem>>, vector<128x16xf32>,
    %c8 = arith.constant 8 : index
    %c0_49 = arith.constant 0 : index
    %c0_50 = arith.constant 0 : index
    %75 = vector.load %arg10[%c8, %c0_49, %c0_50] : memref<18x18x16xf32, #tpu.memory_space<vmem>>, vector<8x16x16xf32>
    %76 = vector.broadcast %23 : vector<1x1x16xf32> to vector<8x16x16xf32>
    %77 = arith.mulf %75, %76 : vector<8x16x16xf32>
    %c8_51 = arith.constant 8 : index
    %c1_52 = arith.constant 1 : index
    %c0_53 = arith.constant 0 : index
    %78 = vector.load %arg10[%c8_51, %c1_52, %c0_53] : memref<18x18x16xf32, #tpu.memory_space<vmem>>, vector<8x16x16xf32>
    %79 = vector.broadcast %24 : vector<1x1x16xf32> to vector<8x16x16xf32>
    %80 = arith.mulf %78, %79 : vector<8x16x16xf32>
    %81 = arith.addf %77, %80 : vector<8x16x16xf32>
    %c8_54 = arith.constant 8 : index
    %c2_55 = arith.constant 2 : index
    %c0_56 = arith.constant 0 : index
    %82 = vector.load %arg10[%c8_54, %c2_55, %c0_56] : memref<18x18x16xf32, #tpu.memory_space<vmem>>, vector<8x16x16xf32>
    %83 = vector.broadcast %25 : vector<1x1x16xf32> to vector<8x16x16xf32>
    %84 = arith.mulf %82, %83 : vector<8x16x16xf32>
    %85 = arith.addf %81, %84 : vector<8x16x16xf32>
    %c9 = arith.constant 9 : index
    %c0_57 = arith.constant 0 : index
    %c0_58 = arith.constant 0 : index
    %86 = vector.load %arg10[%c9, %c0_57, %c0_58] : memref<18x18x16xf32, #tpu.memory_space<vmem>>, vector<8x16x16xf32>
    %87 = vector.broadcast %26 : vector<1x1x16xf32> to vector<8x16x16xf32>
    %88 = arith.mulf %86, %87 : vector<8x16x16xf32>
    %89 = arith.addf %85, %88 : vector<8x16x16xf32>
    %c9_59 = arith.constant 9 : index
    %c1_60 = arith.constant 1 : index
    %c0_61 = arith.constant 0 : index
    %90 = vector.load %arg10[%c9_59, %c1_60, %c0_61] : memref<18x18x16xf32, #tpu.memory_space<vmem>>, vector<8x16x16xf32>
    %91 = vector.broadcast %27 : vector<1x1x16xf32> to vector<8x16x16xf32>
    %92 = arith.mulf %90, %91 : vector<8x16x16xf32>
    %93 = arith.addf %89, %92 : vector<8x16x16xf32>
    %c9_62 = arith.constant 9 : index
    %c2_63 = arith.constant 2 : index
    %c0_64 = arith.constant 0 : index
    %94 = vector.load %arg10[%c9_62, %c2_63, %c0_64] : memref<18x18x16xf32, #tpu.memory_space<vmem>>, vector<8x16x16xf32>
    %95 = vector.broadcast %28 : vector<1x1x16xf32> to vector<8x16x16xf32>
    %96 = arith.mulf %94, %95 : vector<8x16x16xf32>
    %97 = arith.addf %93, %96 : vector<8x16x16xf32>
    %c10 = arith.constant 10 : index
    %c0_65 = arith.constant 0 : index
    %c0_66 = arith.constant 0 : index
    %98 = vector.load %arg10[%c10, %c0_65, %c0_66] : memref<18x18x16xf32, #tpu.memory_space<vmem>>, vector<8x16x16xf32>
    %99 = vector.broadcast %29 : vector<1x1x16xf32> to vector<8x16x16xf32>
    %100 = arith.mulf %98, %99 : vector<8x16x16xf32>
    %101 = arith.addf %97, %100 : vector<8x16x16xf32>
    %c10_67 = arith.constant 10 : index
    %c1_68 = arith.constant 1 : index
    %c0_69 = arith.constant 0 : index
    %102 = vector.load %arg10[%c10_67, %c1_68, %c0_69] : memref<18x18x16xf32, #tpu.memory_space<vmem>>, vector<8x16x16xf32>
    %103 = vector.broadcast %30 : vector<1x1x16xf32> to vector<8x16x16xf32>
    %104 = arith.mulf %102, %103 : vector<8x16x16xf32>
    %105 = arith.addf %101, %104 : vector<8x16x16xf32>
    %c10_70 = arith.constant 10 : index
    %c2_71 = arith.constant 2 : index
    %c0_72 = arith.constant 0 : index
    %106 = vector.load %arg10[%c10_70, %c2_71, %c0_72] : memref<18x18x16xf32, #tpu.memory_space<vmem>>, vector<8x16x16xf32>
    %107 = vector.broadcast %31 : vector<1x1x16xf32> to vector<8x16x16xf32>
    %108 = arith.mulf %106, %107 : vector<8x16x16xf32>
    %109 = arith.addf %105, %108 : vector<8x16x16xf32>
    %110 = vector.broadcast %22 : vector<1x1x16xf32> to vector<8x16x16xf32>
    %111 = arith.addf %109, %110 : vector<8x16x16xf32>
    %cst_73 = arith.constant 0.000000e+00 : f32
    %cst_74 = arith.constant 6.000000e+00 : f32
    %112 = vector.broadcast %cst_73 : f32 to vector<8x16x16xf32>
    %113 = arith.maximumf %112, %111 : vector<8x16x16xf32>
    %114 = vector.broadcast %cst_74 : f32 to vector<8x16x16xf32>
    %115 = arith.minimumf %114, %113 : vector<8x16x16xf32>
    %116 = vector.shape_cast %115 : vector<8x16x16xf32> to vector<128x16xf32>
    %c128 = arith.constant 128 : index
    %c0_75 = arith.constant 0 : index
    %117 = vector.load %arg11[%c128, %c0_75] : memref<256x16xf32, #tpu.memory_space<vmem>>, vector<128x16xf32>
    tpu.vector_store %arg11[%c128, %c0_75], %116 {strides = array<i32>} : memref<256x16xf32, #tpu.memory_space<vmem>>, vector<128x16xf32>,
    %c0_76 = arith.constant 0 : index
    %c0_77 = arith.constant 0 : index
    %118 = vector.load %arg7[%c0_76, %c0_77] : memref<8x16xf32, #tpu.memory_space<vmem>>, vector<8x16xf32>
    %c0_78 = arith.constant 0 : index
    %c0_79 = arith.constant 0 : index
    %119 = vector.load %arg11[%c0_78, %c0_79] : memref<256x16xf32, #tpu.memory_space<vmem>>, vector<256x16xf32>
    %cst_80 = arith.constant dense<0.000000e+00> : vector<8x256xf32>
    %120 = tpu.matmul %118, %119, %cst_80 {dimension_numbers = #tpu.dot_dimension_numbers<[1], [1], [0], [0], [0, 0, 1, 0], [], []>} : vector<8x16xf32>, vector<256x16xf32>, vector<8x256xf32> -> vector<8x256xf32>
    %c0_81 = arith.constant 0 : index
    %c0_82 = arith.constant 0 : index
    %121 = vector.load %arg12[%c0_81, %c0_82] : memref<8x256xf32, #tpu.memory_space<vmem>>, vector<8x256xf32>
    %122 = arith.addf %121, %120 : vector<8x256xf32>
    %c0_83 = arith.constant 0 : index
    %c0_84 = arith.constant 0 : index
    %123 = vector.load %arg12[%c0_83, %c0_84] : memref<8x256xf32, #tpu.memory_space<vmem>>, vector<8x256xf32>
    tpu.vector_store %arg12[%c0_83, %c0_84], %122 {strides = array<i32>} : memref<8x256xf32, #tpu.memory_space<vmem>>, vector<8x256xf32>,
    %c0_i32_85 = arith.constant 0 : i32
    %124 = arith.cmpi eq, %arg1, %c0_i32_85 : i32
    %125 = arith.extui %124 : i1 to i32
    %c0_i32_86 = arith.constant 0 : i32
    %126 = arith.cmpi ne, %125, %c0_i32_86 : i32
    scf.if %126 {
      %c0_87 = arith.constant 0 : index
      %c0_88 = arith.constant 0 : index
      %127 = vector.load %arg8[%c0_87, %c0_88] : memref<8x1xf32, #tpu.memory_space<vmem>>, vector<8x1xf32>
      %c0_89 = arith.constant 0 : index
      %c0_90 = arith.constant 0 : index
      %128 = vector.load %arg12[%c0_89, %c0_90] : memref<8x256xf32, #tpu.memory_space<vmem>>, vector<8x256xf32>
      %129 = vector.broadcast %127 : vector<8x1xf32> to vector<8x256xf32>
      %130 = arith.addf %128, %129 : vector<8x256xf32>
      %c0_91 = arith.constant 0 : index
      %c0_92 = arith.constant 0 : index
      %c0_93 = arith.constant 0 : index
      %131 = vector.load %arg9[%c0_91, %c0_92, %c0_93] : memref<1x8x256xf32, #tpu.memory_space<vmem>>, vector<1x8x256xf32>
      %132 = vector.shape_cast %131 : vector<1x8x256xf32> to vector<8x256xf32>
      %133 = vector.shape_cast %130 : vector<8x256xf32> to vector<1x8x256xf32>
      tpu.vector_store %arg9[%c0_91, %c0_92, %c0_93], %133 {strides = array<i32>} : memref<1x8x256xf32, #tpu.memory_space<vmem>>, vector<1x8x256xf32>,
    } else {
    }
    return
  }
  func.func @transform_0(%arg0: i32, %arg1: i32) -> (i32, i32, i32, i32) {
    %c0_i32 = arith.constant 0 : i32
    %c0_i32_0 = arith.constant 0 : i32
    %c0_i32_1 = arith.constant 0 : i32
    %c0_i32_2 = arith.constant 0 : i32
    return %arg0, %c0_i32, %c0_i32_0, %c0_i32_1 : i32, i32, i32, i32
  }
  func.func @transform_1(%arg0: i32, %arg1: i32) -> (i32, i32) {
    %c0_i32 = arith.constant 0 : i32
    %c0_i32_0 = arith.constant 0 : i32
    return %c0_i32, %arg1 : i32, i32
  }
  func.func @transform_2(%arg0: i32, %arg1: i32) -> (i32, i32) {
    %c0_i32 = arith.constant 0 : i32
    %c0_i32_0 = arith.constant 0 : i32
    return %c0_i32, %arg1 : i32, i32
  }
  func.func @transform_3(%arg0: i32, %arg1: i32) -> (i32, i32, i32) {
    %c0_i32 = arith.constant 0 : i32
    %c0_i32_0 = arith.constant 0 : i32
    %c0_i32_1 = arith.constant 0 : i32
    return %c0_i32, %c0_i32_0, %arg1 : i32, i32, i32
  }
  func.func @transform_4(%arg0: i32, %arg1: i32) -> (i32, i32) {
    %c0_i32 = arith.constant 0 : i32
    %c0_i32_0 = arith.constant 0 : i32
    return %c0_i32, %arg1 : i32, i32
  }
  func.func @transform_5(%arg0: i32, %arg1: i32) -> (i32, i32) {
    %c0_i32 = arith.constant 0 : i32
    %c0_i32_0 = arith.constant 0 : i32
    return %c0_i32, %arg1 : i32, i32
  }
  func.func @transform_6(%arg0: i32, %arg1: i32) -> (i32, i32) {
    %c0_i32 = arith.constant 0 : i32
    %c0_i32_0 = arith.constant 0 : i32
    %c0_i32_1 = arith.constant 0 : i32
    return %c0_i32, %c0_i32_0 : i32, i32
  }
  func.func @transform_7(%arg0: i32, %arg1: i32) -> (i32, i32, i32) {
    %c0_i32 = arith.constant 0 : i32
    %c0_i32_0 = arith.constant 0 : i32
    %c0_i32_1 = arith.constant 0 : i32
    return %arg0, %c0_i32, %c0_i32_0 : i32, i32, i32
  }
}

</mosaic_0001>

<bundles_post_ra>
// kernel: tpu_custom_call.1
= control target key start
LH: loop header
LB: loop body
LE: loop exit
PB: predicated region body
PF: predicated region fallthrough
CT: control target
= control target key end

     0   :  { %12 = vsyncpa [#allocation6], 0  ;;  %s3442_s0 = inlined_call_operand.vmem [shape: f32[2,16,16,4], index: 0, kind: input, shape index: {}]   ;;  %s3443_s1 = inlined_call_operand.vmem [shape: f32[4,16], index: 1, kind: input, shape index: {}]   ;;  %s3444_s2 = inlined_call_operand.vmem [shape: f32[1,16], index: 2, kind: input, shape index: {}]   ;;  %s3445_s3 = inlined_call_operand.vmem [shape: f32[3,3,16], index: 3, kind: input, shape index: {}]   ;;  %s3446_s4 = inlined_call_operand.vmem [shape: f32[1,16], index: 4, kind: input, shape index: {}]   ;;  %s3447_s5 = inlined_call_operand.vmem [shape: f32[8,16], index: 5, kind: input, shape index: {}]   ;;  %s3448_s6 = inlined_call_operand.vmem [shape: f32[8,1], index: 6, kind: input, shape index: {}]   ;;  %s3449_s7 = inlined_call_operand.hbm [shape: f32[2,8,256], index: 7, kind: output, shape index: {}]  }
   0x1   :  { %14 = vsyncpa [#allocation6 + $0x1], 0  ;;  %s2367_s24 = smov 0   ;;  %s2369_s25 = smov 0  }
   0x2   :  { %s2371_s26 = smov 0   ;;  %s2373_s27 = smov 0  }
   0x3   :  { %s2375_s28 = smov 0   ;;  %s2377_s29 = smov 0  }
   0x4 LB: > { %s2095_s30 = sadd.s32 4294967295, %s2323_s29   ;;  %s2096_s8 = sadd.s32 4294967294, %s2323_s29   ;;  %s2323_s29 = sphi %s2377_s29, %s20_s29   ;;  %s2319_s28 = sphi %s2375_s28, %s3555_s28   ;;  %s2315_s27 = sphi %s2373_s27, %s3554_s27   ;;  %s2311_s26 = sphi %s2371_s26, %s3553_s26   ;;  %s2307_s25 = sphi %s2369_s25, %s3552_s25   ;;  %s2303_s24 = sphi %s2367_s24, %s3551_s24  }
   0x5   : > { %s32_s9 = sadd.s32 1, %s2319_s28  ;;  %s216_s10 = sadd.s32 1, %s2311_s26 }
   0x6   : > { %p34_p0 = scmp.ge.s32.totalorder %s32_s9, 2  ;;  %p226_p1 = scmp.ne.s32.totalorder %s2311_s26, %s2307_s25 }
   0x7   : > { %p227_p2 = scmp.eq.s32.totalorder %s2095_s30, 1  ;;  %p232_p3 = scmp.ne.s32.totalorder %s2307_s25, %s2303_s24 }
   0x8   : > { %s3557_s9 = smov (%p34_p0, %s32_s9), 0  ;;  %p233_p5 = scmp.eq.s32.totalorder %s2096_s8, 1 }
   0x9   : > { %p2407_p4 = por %p227_p2, %p226_p1  ;;  %s213_s12 = ssub.s32 %s2319_s28, %s3557_s9 }
   0xa   : > { %p2104_p6 = scmp.ge.s32.totalorder %s2323_s29, 1  ;;  %p214_p7 = scmp.eq.s32.totalorder %s213_s12, 0 }
   0xb   : > { %p2414_p8 = por %p233_p5, %p232_p3  ;;  %p295_p9 = scmp.lt.s32.totalorder %s2323_s29, 3 }
   0xc   : > { %s2420_s14 = scalar_select %p214_p7, %s2311_s26, %s216_s10  }
   0xd   : > { %p296_p10 = pnand %p2104_p6, %p295_p9 }
   0xf   : > { %299 = sbr.rel (%p296_p10) target bundleno = 534 (0x216), region = 48 }
  0x14   : > { %v420_v0 = vld [vmem:[%s3443_s1] sm:$0xf]  ;;  %vm554_vm0 = vcmask 1043456   ;;  %p345_p11 = scmp.lt.s32.totalorder %s2315_s27, 1  ;;  %vm457_vm1 = vcmask 31744   ;;  %vm374_vm2 = vcmask 130048  }
  0x15   : > { %2108 = vmatpush.msk.msra.mxu0 %vm554_vm0, %v420_v0  ;;  %2182 = vmatpush.msk.msra.mxu1 %vm554_vm0, %v420_v0  ;;  %vm383_vm3 = vcmask 122880   ;;  %v2325_v27 = vmov 0.0   ;;  %vm377_vm4 = vcmask 123904   ;;  %v2539_v34 = vld [vmem:[%s3444_s2] ss:$0 sm:$0xff]  ;;  %s342_s8 = sand.u32 1, %s2307_s25  }
  0x16   : > { %2183 = vmatpush.msk.msra.mxu3 %vm554_vm0, %v420_v0  ;;  %s346_s17 = scalar_select %p345_p11, %s2315_s27, 1  ;;  %375 = vst.msk [vmem:[#allocation2] sm:$0xff] %vm374_vm2, %v2325_v27  ;;  %v769_v52 = vld [vmem:[%s3445_s3] sm:$0x7] }
  0x17   : > { %376 = vst.msk [vmem:[#allocation2 + $0x8] sm:$0xff] %vm374_vm2, %v2325_v27  ;;  %v2552_v56 = vperm.slane %v769_v52, 0  ;;  %v2554_v57 = vperm.slane %v769_v52, 1  ;;  %s2105_s10 = sshll.u32 %s342_s8, 4  ;;  %s2181_s12 = sshll.u32 %s2315_s27, 4 }
  0x18   : > { %s2180_s18 = sshll.u32 %s346_s17, 8  ;;  %384 = vst.msk [vmem:[#allocation2] sm:$0x1] %vm383_vm3, %v2325_v27  ;;  %s1954_s17 = scalar_lea.hbm %s3449_s7, %s2181_s12 }
  0x19   : > { %s2430_s21 = scalar_lea.vmem %s3442_s0, %s2180_s18  ;;  %385 = vst.msk [vmem:[#allocation2 + $0x18] sm:$0x1] %vm383_vm3, %v2325_v27  ;;  %s344_s18 = scalar_lea.vmem [#allocation5], %s2105_s10 }
  0x1a   : > { %v422_v1 = vld [vmem:[%s2430_s21] sm:$0xff]  ;;  %v435_v2 = vld [vmem:[%s2430_s21 + $0x68] sm:$0xff]  ;;  %v436_v5 = vld [vmem:[%s2430_s21 + $0x70] sm:$0xff]  ;;  %380 = vst.msk [vmem:[#allocation2 + $0x198] sm:$0xff] %vm374_vm2, %v2325_v27  ;;  %s1956_s19 = sshll.u32 %s344_s18, 4  ;;  %s1958_s20 = sshll.u32 %s1954_s17, 4  ;;  %s1957_s19 = int_to_ptr.vmem [resolvable:$true] %s1956_s19  ;;  %s1959_s20 = int_to_ptr.hbm [resolvable:$true] %s1958_s20 }
  0x1b   : > { %v443_v3 = vld [vmem:[%s2430_s21 + $0xa8] sm:$0xff]  ;;  %2109 = vmatmul.msk.f32.vlgmr.msra.gmra.mxu0 %vm457_vm1, %v422_v1  ;;  %2122 = vmatmul.msk.f32.vlgmr.msra.gmra.mxu1 %vm457_vm1, %v435_v2  ;;  %v444_v6 = vld [vmem:[%s2430_s21 + $0xb0] sm:$0xff]  ;;  %v437_v8 = vld [vmem:[%s2430_s21 + $0x78] sm:$0xff]  ;;  %381 = vst.msk [vmem:[#allocation2 + $0x1a0] sm:$0xff] %vm374_vm2, %v2325_v27  ;;  %s2259_s22 = sshra.s32 %s1959_s20, 4  ;;  %s2265_s10 = scalar_lea.hbm %s3449_s7, 32  ;;  %s2260_s22 = int_to_ptr.hbm [resolvable:$true] %s2259_s22 }
  0x1c   : > { %2130 = vmatmul.msk.f32.vlgmr.msra.gmra.mxu3 %vm457_vm1, %v443_v3  ;;  %v423_v4 = vld [vmem:[%s2430_s21 + $0x8] sm:$0xff]  ;;  %v424_v7 = vld [vmem:[%s2430_s21 + $0x10] sm:$0xff]  ;;  %v445_v9 = vld [vmem:[%s2430_s21 + $0xb8] sm:$0xff]  ;;  %386 = vst.msk [vmem:[#allocation2 + $0x30] sm:$0x1] %vm383_vm3, %v2325_v27  ;;  %v2560_v3 = vperm.slane %v769_v52, 2  ;;  %p2266_p1 = scmp.lt.s32.totalorder %s2260_s22, %s3449_s7 }
  0x1d   : > { %v425_v10 = vld [vmem:[%s2430_s21 + $0x18] sm:$0xff]  ;;  %v438_v11 = vld [vmem:[%s2430_s21 + $0x80] sm:$0xff]  ;;  %v439_v14 = vld [vmem:[%s2430_s21 + $0x88] sm:$0xff]  ;;  %387 = vst.msk [vmem:[#allocation2 + $0x48] sm:$0x1] %vm383_vm3, %v2325_v27  ;;  %s2261_s27 = scalar_lea.hbm %s2260_s22, 16 }
  0x1e   : > { %v446_v12 = vld [vmem:[%s2430_s21 + $0xc0] sm:$0xff]  ;;  %v447_v15 = vld [vmem:[%s2430_s21 + $0xc8] sm:$0xff]  ;;  %v440_v17 = vld [vmem:[%s2430_s21 + $0x90] sm:$0xff]  ;;  %388 = vst.msk [vmem:[#allocation2 + $0x60] sm:$0x1] %vm383_vm3, %v2325_v27  ;;  %p2262_p12 = scmp.ne.s32.totalorder %s2260_s22, %s2261_s27  ;;  %p2267_p2 = scmp.lt.s32.totalorder %s2265_s10, %s2261_s27 }
  0x1f   : > { %v426_v13 = vld [vmem:[%s2430_s21 + $0x20] sm:$0xff]  ;;  %v427_v16 = vld [vmem:[%s2430_s21 + $0x28] sm:$0xff]  ;;  %v448_v18 = vld [vmem:[%s2430_s21 + $0xd0] sm:$0xff]  ;;  %389 = vst.msk [vmem:[#allocation2 + $0x78] sm:$0x1] %vm383_vm3, %v2325_v27 }
  0x20   : > { %v428_v19 = vld [vmem:[%s2430_s21 + $0x30] sm:$0xff]  ;;  %v441_v20 = vld [vmem:[%s2430_s21 + $0x98] sm:$0xff]  ;;  %v442_v23 = vld [vmem:[%s2430_s21 + $0xa0] sm:$0xff]  ;;  %390 = vst.msk [vmem:[#allocation2 + $0x90] sm:$0x1] %vm383_vm3, %v2325_v27  ;;  %p2263_p13 = pnand %p2262_p12, %p2407_p4  ;;  %p2268_p3 = por %p2267_p2, %p2266_p1 }
  0x21   : > { %v449_v21 = vld [vmem:[%s2430_s21 + $0xd8] sm:$0xff]  ;;  %v450_v24 = vld [vmem:[%s2430_s21 + $0xe0] sm:$0xff]  ;;  %v451_v26 = vld [vmem:[%s2430_s21 + $0xe8] sm:$0xff]  ;;  %391 = vst.msk [vmem:[#allocation2 + $0xa8] sm:$0x1] %vm383_vm3, %v2325_v27 }
  0x22   : > { %v429_v22 = vld [vmem:[%s2430_s21 + $0x38] sm:$0xff]  ;;  %v430_v25 = vld [vmem:[%s2430_s21 + $0x40] sm:$0xff]  ;;  %v431_v28 = vld [vmem:[%s2430_s21 + $0x48] sm:$0xff]  ;;  %392 = vst.msk [vmem:[#allocation2 + $0xc0] sm:$0x1] %vm383_vm3, %v2325_v27  ;;  %p2264_p0 = pneg %p2263_p13 }
  0x23   : > { %2110 = vmatmul.msk.f32.gmra.mxu0 %vm457_vm1, %v423_v4  ;;  %2123 = vmatmul.msk.f32.gmra.mxu1 %vm457_vm1, %v436_v5  ;;  %v452_v29 = vld [vmem:[%s2430_s21 + $0xf0] sm:$0xff]  ;;  %v453_v31 = vld [vmem:[%s2430_s21 + $0xf8] sm:$0xff]  ;;  %393 = vst.msk [vmem:[#allocation2 + $0xd8] sm:$0x1] %vm383_vm3, %v2325_v27  ;;  %v434_v33 = vld [vmem:[%s2430_s21 + $0x60] sm:$0xff] }
  0x24   : > { %2131 = vmatmul.msk.f32.gmra.mxu3 %vm457_vm1, %v444_v6  ;;  %v432_v30 = vld [vmem:[%s2430_s21 + $0x50] sm:$0xff]  ;;  %394 = vst.msk [vmem:[#allocation2 + $0xf0] sm:$0x1] %vm383_vm3, %v2325_v27  ;;  %v433_v32 = vld [vmem:[%s2430_s21 + $0x58] sm:$0xff]  ;;  %v773_v59 = vld [vmem:[#allocation2] sm:$0xff]  ;;  %s1943_s21 = scalar_lea.sflag [#allocation6], %s342_s8  ;;  %p2269_p5 = pnand %p2268_p3, %p2264_p0 }
  0x25   : > { %395 = vst.msk [vmem:[#allocation2 + $0x108] sm:$0x1] %vm383_vm3, %v2325_v27  ;;  %v806_v60 = vld [vmem:[#allocation2 + $0x1] sm:$0xff]  ;;  %v790_v1 = vmul.f32 %v2552_v56, %v773_v59 }
  0x26   : > { %396 = vst.msk [vmem:[#allocation2 + $0x120] sm:$0x1] %vm383_vm3, %v2325_v27  ;;  %v774_v63 = vld [vmem:[#allocation2 + $0x8] sm:$0xff]  ;;  %v823_v2 = vmul.f32 %v2554_v57, %v806_v60  ;;  %v770_v4 = vld [vmem:[%s3445_s3 + $0x4] sm:$0x7] }
  0x27   : > { %397 = vst.msk [vmem:[#allocation2 + $0x138] sm:$0x1] %vm383_vm3, %v2325_v27  ;;  %v855_v5 = vld [vmem:[#allocation2 + $0x2] sm:$0xff]  ;;  %v791_v6 = vmul.f32 %v2552_v56, %v774_v63 }
  0x28   : > { %398 = vst.msk [vmem:[#allocation2 + $0x150] sm:$0x1] %vm383_vm3, %v2325_v27 }
  0x29   : > { %399 = vst.msk [vmem:[#allocation2 + $0x168] sm:$0x1] %vm383_vm3, %v2325_v27 }
  0x2a   : > { %400 = vst.msk [vmem:[#allocation2 + $0x180] sm:$0x1] %vm383_vm3, %v2325_v27 }
  0x2b   : > { %2111 = vmatmul.msk.f32.gmra.mxu0 %vm457_vm1, %v424_v7  ;;  %2124 = vmatmul.msk.f32.gmra.mxu1 %vm457_vm1, %v437_v8  ;;  %403 = vst.msk [vmem:[#allocation2 + $0x29] sm:$0x1] %vm383_vm3, %v2325_v27 }
  0x2c   : > { %2132 = vmatmul.msk.f32.gmra.mxu3 %vm457_vm1, %v445_v9  ;;  %404 = vst.msk [vmem:[#allocation2 + $0x41] sm:$0x1] %vm383_vm3, %v2325_v27 }
  0x2d   : > { %405 = vst.msk [vmem:[#allocation2 + $0x59] sm:$0x1] %vm383_vm3, %v2325_v27 }
  0x2e   : > { %406 = vst.msk [vmem:[#allocation2 + $0x71] sm:$0x1] %vm383_vm3, %v2325_v27 }
  0x2f   : > { %407 = vst.msk [vmem:[#allocation2 + $0x89] sm:$0x1] %vm383_vm3, %v2325_v27 }
  0x30   : > { %408 = vst.msk [vmem:[#allocation2 + $0xa1] sm:$0x1] %vm383_vm3, %v2325_v27 }
  0x31   : > { %409 = vst.msk [vmem:[#allocation2 + $0xb9] sm:$0x1] %vm383_vm3, %v2325_v27 }
  0x32   : > { %410 = vst.msk [vmem:[#allocation2 + $0xd1] sm:$0x1] %vm383_vm3, %v2325_v27 }
  0x33   : > { %2112 = vmatmul.msk.f32.gmra.mxu0 %vm457_vm1, %v425_v10  ;;  %2125 = vmatmul.msk.f32.gmra.mxu1 %vm457_vm1, %v438_v11  ;;  %411 = vst.msk [vmem:[#allocation2 + $0xe9] sm:$0x1] %vm383_vm3, %v2325_v27 }
  0x34   : > { %2133 = vmatmul.msk.f32.gmra.mxu3 %vm457_vm1, %v446_v12  ;;  %412 = vst.msk [vmem:[#allocation2 + $0x101] sm:$0x1] %vm383_vm3, %v2325_v27  ;;  %v839_v12 = vadd.f32 %v823_v2, %v790_v1 }
  0x35   : > { %413 = vst.msk [vmem:[#allocation2 + $0x119] sm:$0x1] %vm383_vm3, %v2325_v27 }
  0x36   : > { %414 = vst.msk [vmem:[#allocation2 + $0x131] sm:$0x1] %vm383_vm3, %v2325_v27 }
  0x37   : > { %415 = vst.msk [vmem:[#allocation2 + $0x149] sm:$0x1] %vm383_vm3, %v2325_v27 }
  0x38   : > { %416 = vst.msk [vmem:[#allocation2 + $0x161] sm:$0x1] %vm383_vm3, %v2325_v27 }
  0x39   : > { %417 = vst.msk [vmem:[#allocation2 + $0x179] sm:$0x1] %vm383_vm3, %v2325_v27 }
  0x3a   : > { %418 = vst.msk [vmem:[#allocation2 + $0x191] sm:$0x1] %vm383_vm3, %v2325_v27 }
  0x3b   : > { %2113 = vmatmul.msk.f32.gmra.mxu0 %vm457_vm1, %v426_v13  ;;  %2126 = vmatmul.msk.f32.gmra.mxu1 %vm457_vm1, %v439_v14  ;;  %401 = vst.msk [vmem:[#allocation2 + $0x198] sm:$0x1] %vm383_vm3, %v2325_v27  ;;  %v872_v13 = vmul.f32 %v2560_v3, %v855_v5  ;;  %v2571_v14 = vperm.slane %v770_v4, 0 }
  0x3c   : > { %2134 = vmatmul.msk.f32.gmra.mxu3 %vm457_vm1, %v447_v15  ;;  %378 = vst.msk [vmem:[#allocation2 + $0x10] sm:$0x3] %vm377_vm4, %v2325_v27 }
  0x3d   : > { %402 = vst.msk [vmem:[#allocation2 + $0x11] sm:$0x1] %vm383_vm3, %v2325_v27 }
  0x3e   : > { %382 = vst.msk [vmem:[#allocation2 + $0x1a8] sm:$0x3] %vm377_vm4, %v2325_v27 }
  0x3f   : > { %419 = vst.msk [vmem:[#allocation2 + $0x1a9] sm:$0x1] %vm383_vm3, %v2325_v27  ;;  %v888_v27 = vadd.f32 %v872_v13, %v839_v12 }
  0x43   : > { %2114 = vmatmul.msk.f32.gmra.mxu0 %vm457_vm1, %v427_v16  ;;  %2127 = vmatmul.msk.f32.gmra.mxu1 %vm457_vm1, %v440_v17  ;;  %v807_v0 = vld [vmem:[#allocation2 + $0x9] sm:$0xff] }
  0x44   : > { %2135 = vmatmul.msk.f32.gmra.mxu3 %vm457_vm1, %v448_v18  ;;  %v824_v7 = vmul.f32 %v2554_v57, %v807_v0  ;;  %v856_v10 = vld [vmem:[#allocation2 + $0xa] sm:$0xff] }
  0x45   : > { %v771_v16 = vld [vmem:[%s3445_s3 + $0x8] sm:$0x7]  ;;  %v873_v18 = vmul.f32 %v2560_v3, %v856_v10 }
  0x46   : > { %v840_v17 = vadd.f32 %v824_v7, %v791_v6 }
  0x4b   : > { %2115 = vmatmul.msk.f32.gmra.mxu0 %vm457_vm1, %v428_v19  ;;  %2128 = vmatmul.msk.f32.gmra.mxu1 %vm457_vm1, %v441_v20 }
  0x4c   : > { %2136 = vmatmul.msk.f32.gmra.mxu3 %vm457_vm1, %v449_v21 }
  0x53   : > { %2116 = vmatmul.msk.f32.gmra.mxu0 %vm457_vm1, %v429_v22  ;;  %2129 = vmatmul.msk.f32.gmra.mxu1 %vm457_vm1, %v442_v23 }
  0x54   : > { %2137 = vmatmul.msk.f32.gmra.mxu3 %vm457_vm1, %v450_v24 }
  0x5b   : > { %2117 = vmatmul.msk.f32.gmra.mxu0 %vm457_vm1, %v430_v25  ;;  %v2577_v25 = vperm.slane %v770_v4, 1 }
  0x5c   : > { %2138 = vmatmul.msk.f32.gmra.mxu3 %vm457_vm1, %v451_v26 }
  0x63   : > { %2118 = vmatmul.msk.f32.gmra.mxu0 %vm457_vm1, %v431_v28  ;;  %v2579_v28 = vperm.slane %v770_v4, 2 }
  0x64   : > { %2139 = vmatmul.msk.f32.gmra.mxu3 %vm457_vm1, %v452_v29  ;;  %v2581_v29 = vperm.slane %v771_v16, 1 }
  0x6b   : > { %2119 = vmatmul.msk.f32.gmra.mxu0 %vm457_vm1, %v432_v30  ;;  %v2583_v30 = vperm.slane %v771_v16, 2 }
  0x6c   : > { %2140 = vmatmul.msk.f32.gmra.mxu3 %vm457_vm1, %v453_v31 }
  0x73   : > { %2120 = vmatmul.msk.f32.gmra.mxu0 %vm457_vm1, %v433_v32 }
  0x7b   : > { %2121 = vmatmul.msk.f32.gmra.mxu0 %vm457_vm1, %v434_v33  ;;  %v889_v33 = vadd.f32 %v873_v18, %v840_v17 }
  0x98   : > { %v575_v35 = vpop.f32.mrf.mxu0  ;;  %v614_v36 = vpop.f32.mrf.mxu1 }
  0x99   : > { %v576_v37 = vadd.f32 %v2539_v34, %v575_v35  ;;  %v615_v38 = vadd.f32 %v2539_v34, %v614_v36 }
  0x9b   : > { %v671_v39 = vmax.f32 %v576_v37, 0.0  ;;  %v684_v40 = vmax.f32 %v615_v38, 0.0 }
  0x9d   : > { %v703_v41 = vmin.f32 %v671_v39, 6.0  ;;  %v716_v42 = vmin.f32 %v684_v40, 6.0 }
  0x9f   : > { %737 = vst.msk [vmem:[#allocation2 + $0x19] sm:$0xff] %vm374_vm2, %v703_v41  ;;  %v638_v43 = vpop.f32.mrf.mxu3 }
  0xa0   : > { %750 = vst.msk [vmem:[#allocation2 + $0xb1] sm:$0xff] %vm374_vm2, %v716_v42  ;;  %v639_v44 = vadd.f32 %v2539_v34, %v638_v43  ;;  %v578_v45 = vpop.f32.mrf.mxu0  ;;  %v617_v46 = vpop.f32.mrf.mxu1 }
  0xa1   : > { %v579_v47 = vadd.f32 %v2539_v34, %v578_v45  ;;  %v618_v48 = vadd.f32 %v2539_v34, %v617_v46  ;;  %v2592_v46 = vperm.slane %v771_v16, 0 }
  0xa2   : > { %v692_v49 = vmax.f32 %v639_v44, 0.0 }
  0xa3   : > { %v672_v50 = vmax.f32 %v579_v47, 0.0  ;;  %v685_v51 = vmax.f32 %v618_v48, 0.0 }
  0xa4   : > { %v724_v53 = vmin.f32 %v692_v49, 6.0 }
  0xa5   : > { %v704_v54 = vmin.f32 %v672_v50, 6.0  ;;  %v717_v55 = vmin.f32 %v685_v51, 6.0 }
  0xa6   : > { %758 = vst.msk [vmem:[#allocation2 + $0x111] sm:$0xff] %vm374_vm2, %v724_v53  ;;  %v775_v22 = vld [vmem:[#allocation2 + $0x18] sm:$0xff] }
  0xa7   : > { %738 = vst.msk [vmem:[#allocation2 + $0x21] sm:$0xff] %vm374_vm2, %v704_v54  ;;  %v641_v58 = vpop.f32.mrf.mxu3  ;;  %v808_v26 = vld [vmem:[#allocation2 + $0x19] sm:$0xff]  ;;  %v921_v31 = vmul.f32 %v2571_v14, %v775_v22  ;;  %v821_v32 = vld [vmem:[#allocation2 + $0xb1] sm:$0xff]  ;;  %v792_v43 = vmul.f32 %v2552_v56, %v775_v22 }
  0xa8   : > { %751 = vst.msk [vmem:[#allocation2 + $0xc1] sm:$0xff] %vm374_vm2, %v717_v55  ;;  %v581_v61 = vpop.f32.mrf.mxu0  ;;  %v620_v62 = vpop.f32.mrf.mxu1  ;;  %v642_v8 = vadd.f32 %v2539_v34, %v641_v58  ;;  %v870_v37 = vld [vmem:[#allocation2 + $0xb2] sm:$0xff]  ;;  %v825_v44 = vmul.f32 %v2554_v57, %v808_v26  ;;  %v970_v45 = vmul.f32 %v2577_v25, %v808_v26  ;;  %v2596_v47 = vmul.f32 %v2554_v57, %v821_v32 }
  0xa9   : > { %v582_v9 = vadd.f32 %v2539_v34, %v581_v61  ;;  %v621_v11 = vadd.f32 %v2539_v34, %v620_v62  ;;  %v937_v53 = vadd.f32 %v921_v31, %v888_v27  ;;  %v2600_v54 = vmul.f32 %v2560_v3, %v870_v37 }
  0xaa   : > { %v693_v19 = vmax.f32 %v642_v8, 0.0  ;;  %3452 = vst [vmem:[#allocation8_spill] sm:$0xff] %v2596_v47  ;;  %v2607_v0 = vmul.f32 %v2577_v25, %v821_v32  ;;  %v841_v8 = vadd.f32 %v825_v44, %v792_v43  ;;  %v2615_v10 = vmul.f32 %v2581_v29, %v821_v32 }
  0xab   : > { %v673_v20 = vmax.f32 %v582_v9, 0.0  ;;  %v686_v23 = vmax.f32 %v621_v11, 0.0  ;;  %3453 = vst [vmem:[#allocation9_spill] sm:$0xff] %v2600_v54  ;;  %v2612_v9 = vmul.f32 %v2579_v28, %v870_v37  ;;  %v986_v13 = vadd.f32 %v970_v45, %v937_v53 }
  0xac   : > { %v725_v35 = vmin.f32 %v693_v19, 6.0  ;;  %3454 = vst [vmem:[#allocation10_spill] sm:$0xff] %v2607_v0 }
  0xad   : > { %v705_v36 = vmin.f32 %v673_v20, 6.0  ;;  %v718_v39 = vmin.f32 %v686_v23, 6.0  ;;  %v1306_v1 = vld [vmem:[#allocation2 + $0x111] sm:$0xff]  ;;  %3455 = vst [vmem:[#allocation11_spill] sm:$0xff] %v2612_v9 }
  0xae   : > { %v776_v38 = vld [vmem:[#allocation2 + $0x20] sm:$0xff]  ;;  %759 = vst.msk [vmem:[#allocation2 + $0x121] sm:$0xff] %vm374_vm2, %v725_v35  ;;  %v1354_v2 = vld [vmem:[#allocation2 + $0x112] sm:$0xff]  ;;  %v2623_v19 = vmul.f32 %v1306_v1, %v2554_v57  ;;  %v2631_v26 = vmul.f32 %v1306_v1, %v2577_v25 }
  0xaf   : > { %v644_v15 = vpop.f32.mrf.mxu3  ;;  %v809_v48 = vld [vmem:[#allocation2 + $0x21] sm:$0xff]  ;;  %739 = vst.msk [vmem:[#allocation2 + $0x31] sm:$0xff] %vm374_vm2, %v705_v36  ;;  %v922_v55 = vmul.f32 %v2571_v14, %v776_v38  ;;  %v793_v4 = vmul.f32 %v2552_v56, %v776_v38  ;;  %v2626_v20 = vmul.f32 %v1354_v2, %v2560_v3  ;;  %v2634_v27 = vmul.f32 %v1354_v2, %v2579_v28 }
  0xb0   : > { %v584_v21 = vpop.f32.mrf.mxu0  ;;  %v623_v24 = vpop.f32.mrf.mxu1  ;;  %v645_v40 = vadd.f32 %v2539_v34, %v644_v15  ;;  %752 = vst.msk [vmem:[#allocation2 + $0xc9] sm:$0xff] %vm374_vm2, %v718_v39  ;;  %v826_v5 = vmul.f32 %v2554_v57, %v809_v48  ;;  %v857_v6 = vld [vmem:[#allocation2 + $0x1a] sm:$0xff]  ;;  %v2619_v15 = vmul.f32 %v2583_v30, %v870_v37  ;;  %v858_v16 = vld [vmem:[#allocation2 + $0x22] sm:$0xff]  ;;  %v971_v32 = vmul.f32 %v2577_v25, %v809_v48 }
  0xb1   : > { %v585_v41 = vadd.f32 %v2539_v34, %v584_v21  ;;  %v624_v42 = vadd.f32 %v2539_v34, %v623_v24  ;;  %3456 = vst [vmem:[#allocation12_spill] sm:$0xff] %v2615_v10  ;;  %v938_v17 = vadd.f32 %v922_v55, %v889_v33  ;;  %v874_v21 = vmul.f32 %v2560_v3, %v857_v6  ;;  %v918_v22 = vld [vmem:[#allocation2 + $0xc0] sm:$0xff] }
  0xb2   : > { %v694_v49 = vmax.f32 %v645_v40, 0.0  ;;  %3457 = vst [vmem:[#allocation13_spill] sm:$0xff] %v2619_v15  ;;  %v967_v23 = vld [vmem:[#allocation2 + $0xc1] sm:$0xff]  ;;  %v842_v31 = vadd.f32 %v826_v5, %v793_v4  ;;  %v2639_v33 = vmul.f32 %v1306_v1, %v2581_v29  ;;  %v2642_v35 = vmul.f32 %v1354_v2, %v2583_v30 }
  0xb3   : > { %v674_v50 = vmax.f32 %v585_v41, 0.0  ;;  %v687_v51 = vmax.f32 %v624_v42, 0.0  ;;  %v875_v36 = vmul.f32 %v2560_v3, %v858_v16  ;;  %v1019_v37 = vmul.f32 %v2579_v28, %v857_v6 }
  0xb4   : > { %v726_v60 = vmin.f32 %v694_v49, 6.0  ;;  %3458 = vst [vmem:[#allocation14_spill] sm:$0xff] %v2639_v33  ;;  %v987_v40 = vadd.f32 %v971_v32, %v938_v17  ;;  %v1283_v41 = vmul.f32 %v918_v22, %v2552_v56  ;;  %v1315_v42 = vmul.f32 %v967_v23, %v2554_v57 }
  0xb5   : > { %v706_v61 = vmin.f32 %v674_v50, 6.0  ;;  %v719_v62 = vmin.f32 %v687_v51, 6.0  ;;  %3459 = vst [vmem:[#allocation15_spill] sm:$0xff] %v2642_v35  ;;  %v1275_v38 = vld [vmem:[#allocation2 + $0x120] sm:$0xff]  ;;  %v890_v48 = vadd.f32 %v874_v21, %v841_v8  ;;  %v1020_v49 = vmul.f32 %v2579_v28, %v858_v16 }
  0xb6   : > { %760 = vst.msk [vmem:[#allocation2 + $0x129] sm:$0xff] %vm374_vm2, %v726_v60  ;;  %v1307_v39 = vld [vmem:[#allocation2 + $0x121] sm:$0xff]  ;;  %v777_v43 = vld [vmem:[#allocation2 + $0x30] sm:$0xff]  ;;  %v2654_v50 = vmul.f32 %v2571_v14, %v918_v22  ;;  %v2657_v51 = vmul.f32 %v2577_v25, %v967_v23  ;;  %v2662_v53 = vmul.f32 %v2592_v46, %v918_v22  ;;  %v1291_v55 = vmul.f32 %v1275_v38, %v2552_v56 }
  0xb7   : > { %v647_v52 = vpop.f32.mrf.mxu3  ;;  %740 = vst.msk [vmem:[#allocation2 + $0x39] sm:$0xff] %vm374_vm2, %v706_v61  ;;  %v810_v44 = vld [vmem:[#allocation2 + $0x31] sm:$0xff]  ;;  %v2667_v60 = vmul.f32 %v2581_v29, %v967_v23  ;;  %v794_v61 = vmul.f32 %v2552_v56, %v777_v43  ;;  %v968_v1 = vld [vmem:[#allocation2 + $0xc9] sm:$0xff]  ;;  %v2673_v4 = vadd.f32 %v1020_v49, %v987_v40  ;;  %v1331_v5 = vadd.f32 %v1315_v42, %v1283_v41 }
  0xb8   : > { %v648_v58 = vadd.f32 %v2539_v34, %v647_v52  ;;  %v587_v59 = vpop.f32.mrf.mxu0  ;;  %v626_v12 = vpop.f32.mrf.mxu1  ;;  %753 = vst.msk [vmem:[#allocation2 + $0xd9] sm:$0xff] %vm374_vm2, %v719_v62  ;;  %v2659_v52 = vadd.f32 %v875_v36, %v842_v31  ;;  %v827_v62 = vmul.f32 %v2554_v57, %v810_v44  ;;  %v923_v6 = vmul.f32 %v2571_v14, %v777_v43  ;;  %v1017_v41 = vld [vmem:[#allocation2 + $0xca] sm:$0xff] }
  0xb9   : > { %v588_v63 = vadd.f32 %v2539_v34, %v587_v59  ;;  %v2650_v45 = vadd.f32 %v2539_v34, %v626_v12  ;;  %3460 = vst [vmem:[#allocation16_spill] sm:$0xff] %v2654_v50  ;;  %v1035_v59 = vadd.f32 %v1019_v37, %v986_v13  ;;  %v2683_v12 = vmul.f32 %v1307_v39, %v2577_v25 }
  0xba   : > { %v695_v7 = vmax.f32 %v648_v58, 0.0  ;;  %3461 = vst [vmem:[#allocation17_spill] sm:$0xff] %v2657_v51  ;;  %v1323_v58 = vmul.f32 %v1307_v39, %v2554_v57  ;;  %v2686_v13 = vmul.f32 %v1275_v38, %v2592_v46  ;;  %v1069_v16 = vmul.f32 %v2592_v46, %v777_v43 }
  0xbb   : > { %v675_v11 = vmax.f32 %v588_v63, 0.0  ;;  %3462 = vst [vmem:[#allocation18_spill] sm:$0xff] %v2662_v53  ;;  %v919_v63 = vld [vmem:[#allocation2 + $0xc8] sm:$0xff]  ;;  %v2692_v23 = vmul.f32 %v1307_v39, %v2581_v29  ;;  %v1316_v32 = vmul.f32 %v968_v1, %v2554_v57  ;;  %v843_v36 = vadd.f32 %v827_v62, %v794_v61 }
  0xbc   : > { %v727_v18 = vmin.f32 %v695_v7, 6.0  ;;  %3463 = vst [vmem:[#allocation19_spill] sm:$0xff] %v2667_v60  ;;  %v1339_v22 = vadd.f32 %v1323_v58, %v1291_v55  ;;  %v1284_v31 = vmul.f32 %v919_v63, %v2552_v56  ;;  %v972_v37 = vmul.f32 %v2577_v25, %v810_v44 }
  0xbd   : > { %v707_v24 = vmin.f32 %v675_v11, 6.0  ;;  %v2680_v11 = vmul.f32 %v1275_v38, %v2571_v14  ;;  %3464 = vst [vmem:[#allocation20_spill] sm:$0xff] %v2686_v13  ;;  %v1276_v17 = vld [vmem:[#allocation2 + $0x128] sm:$0xff]  ;;  %v1118_v38 = vmul.f32 %v2581_v29, %v810_v44  ;;  %v2699_v40 = vmul.f32 %v2571_v14, %v919_v63 }
  0xbe   : > { %761 = vst.msk [vmem:[#allocation2 + $0x139] sm:$0xff] %vm374_vm2, %v727_v18  ;;  %v1308_v18 = vld [vmem:[#allocation2 + $0x129] sm:$0xff]  ;;  %v939_v42 = vadd.f32 %v923_v6, %v890_v48  ;;  %v2702_v43 = vmul.f32 %v2577_v25, %v968_v1  ;;  %v1292_v39 = vmul.f32 %v1276_v17, %v2552_v56  ;;  %v1085_v7 = vadd.f32 %v1069_v16, %v1035_v59  ;;  %v778_v35 = vld [vmem:[#allocation2 + $0x38] sm:$0xff] }
  0xbf   : > { %741 = vst.msk [vmem:[#allocation2 + $0x49] sm:$0xff] %vm374_vm2, %v707_v24  ;;  %v2671_v2 = vpop.f32.mrf.mxu3  ;;  %v1016_v24 = vld [vmem:[#allocation2 + $0xc2] sm:$0xff]  ;;  %v1324_v49 = vmul.f32 %v1308_v18, %v2554_v57  ;;  %v1356_v58 = vld [vmem:[#allocation2 + $0x12a] sm:$0xff]  ;;  %v2710_v44 = vmul.f32 %v2579_v28, %v1017_v41  ;;  %v811_v48 = vld [vmem:[#allocation2 + $0x39] sm:$0xff]  ;;  %v2714_v6 = vmul.f32 %v2592_v46, %v919_v63  ;;  %v1332_v15 = vadd.f32 %v1316_v32, %v1284_v31 }
  0xc0   : > { %v2677_v8 = vpop.f32.mrf.mxu0  ;;  %v2689_v21 = vpop.f32.mrf.mxu1  ;;  %3465 = vst [vmem:[#allocation21_spill] sm:$0xff] %v2692_v23  ;;  %v1355_v55 = vld [vmem:[#allocation2 + $0x122] sm:$0xff]  ;;  %v2707_v61 = vmul.f32 %v2579_v28, %v1016_v24  ;;  %v1363_v62 = vmul.f32 %v1016_v24, %v2560_v3  ;;  %v2717_v23 = vmul.f32 %v2581_v29, %v968_v1  ;;  %v1364_v60 = vmul.f32 %v1017_v41, %v2560_v3  ;;  %v859_v1 = vld [vmem:[#allocation2 + $0x32] sm:$0xff] }
  0xc1   : > { %3466 = vst [vmem:[#allocation22_spill] sm:$0xff] %v2699_v40  ;;  %v2721_v59 = vmul.f32 %v2583_v30, %v1016_v24  ;;  %v2724_v16 = vmul.f32 %v2583_v30, %v1017_v41  ;;  %v1340_v53 = vadd.f32 %v1324_v49, %v1292_v39  ;;  %v795_v63 = vmul.f32 %v2552_v56, %v778_v35 }
  0xc2   : > { %3467 = vst [vmem:[#allocation23_spill] sm:$0xff] %v2702_v43  ;;  %v924_v31 = vmul.f32 %v2571_v14, %v778_v35  ;;  %v988_v32 = vadd.f32 %v972_v37, %v939_v42  ;;  %v2731_v10 = vadd.f32 %v1363_v62, %v1331_v5  ;;  %v2734_v24 = vmul.f32 %v1276_v17, %v2571_v14 }
  0xc3   : > { %3468 = vst [vmem:[#allocation24_spill] sm:$0xff] %v2707_v61  ;;  %v1372_v61 = vmul.f32 %v1356_v58, %v2560_v3  ;;  %v2742_v39 = vmul.f32 %v1355_v55, %v2579_v28  ;;  %v1070_v49 = vmul.f32 %v2592_v46, %v778_v35  ;;  %v2748_v5 = vmul.f32 %v1356_v58, %v2579_v28 }
  0xc4   : > { %3469 = vst [vmem:[#allocation25_spill] sm:$0xff] %v2710_v44  ;;  %v1371_v44 = vmul.f32 %v1355_v55, %v2560_v3  ;;  %v876_v37 = vmul.f32 %v2560_v3, %v859_v1  ;;  %v2755_v42 = vmul.f32 %v1276_v17, %v2592_v46  ;;  %v940_v35 = vadd.f32 %v924_v31, %v2659_v52  ;;  %v1066_v52 = vld [vmem:[#allocation2 + $0xd8] sm:$0xff] }
  0xc5   : > { %3470 = vst [vmem:[#allocation26_spill] sm:$0xff] %v2714_v6  ;;  %v828_v6 = vmul.f32 %v2554_v57, %v811_v48  ;;  %v1167_v9 = vmul.f32 %v2583_v30, %v859_v1 }
  0xc6   : > { %3471 = vst [vmem:[#allocation27_spill] sm:$0xff] %v2717_v23  ;;  %v1134_v23 = vadd.f32 %v1118_v38, %v1085_v7  ;;  %v2745_v51 = vadd.f32 %v1371_v44, %v1339_v22  ;;  %v860_v7 = vld [vmem:[#allocation2 + $0x3a] sm:$0xff]  ;;  %v2752_v38 = vadd.f32 %v1372_v61, %v1340_v53  ;;  %v2759_v22 = vmul.f32 %v1308_v18, %v2581_v29 }
  0xc7   : > { %3472 = vst [vmem:[#allocation28_spill] sm:$0xff] %v2721_v59  ;;  %v653_v41 = vpop.f32.mrf.mxu3  ;;  %v2736_v59 = vadd.f32 %v1364_v60, %v1332_v15  ;;  %v1021_v15 = vmul.f32 %v2579_v28, %v859_v1  ;;  %v844_v62 = vadd.f32 %v828_v6, %v795_v63  ;;  %v2762_v44 = vmul.f32 %v1355_v55, %v2583_v30  ;;  %v1115_v63 = vld [vmem:[#allocation2 + $0xd9] sm:$0xff] }
  0xc8   : > { %3473 = vst [vmem:[#allocation29_spill] sm:$0xff] %v2724_v16  ;;  %v2739_v16 = vmul.f32 %v1308_v18, %v2577_v25  ;;  %v593_v43 = vpop.f32.mrf.mxu0  ;;  %v632_v60 = vpop.f32.mrf.mxu1  ;;  %v877_v53 = vmul.f32 %v2560_v3, %v860_v7  ;;  %v973_v61 = vmul.f32 %v2577_v25, %v811_v48  ;;  %v1022_v17 = vmul.f32 %v2579_v28, %v860_v7 }
  0xc9   : > { %3474 = vst [vmem:[#allocation30_spill] sm:$0xff] %v2742_v39  ;;  %v1086_v6 = vadd.f32 %v1070_v49, %v2673_v4  ;;  %v2772_v18 = vadd.f32 %v876_v37, %v843_v36  ;;  %v2774_v31 = vadd.f32 %v1021_v15, %v988_v32  ;;  %v1119_v55 = vmul.f32 %v2581_v29, %v811_v48  ;;  %v1277_v15 = vld [vmem:[#allocation2 + $0x138] sm:$0xff] }
  0xca   : > { %3475 = vst [vmem:[#allocation31_spill] sm:$0xff] %v2748_v5  ;;  %v2765_v5 = vmul.f32 %v1356_v58, %v2583_v30  ;;  %v1168_v58 = vmul.f32 %v2583_v30, %v860_v7  ;;  %v989_v1 = vadd.f32 %v973_v61, %v940_v35  ;;  %v2786_v4 = vadd.f32 %v1167_v9, %v1134_v23 }
  0xcb   : > { %3476 = vst [vmem:[#allocation32_spill] sm:$0xff] %v2755_v42  ;;  %v1285_v36 = vmul.f32 %v1066_v52, %v2552_v56  ;;  %v1317_v32 = vmul.f32 %v1115_v63, %v2554_v57  ;;  %v3483_v49 = vmax.f32 %v2650_v45, 0.0  ;;  %v1135_v37 = vadd.f32 %v1119_v55, %v1086_v6 }
  0xcc   : > { %3477 = vst [vmem:[#allocation33_spill] sm:$0xff] %v2759_v22  ;;  %v2784_v22 = vmul.f32 %v2581_v29, %v1115_v63  ;;  %v1412_v7 = vmul.f32 %v1066_v52, %v2571_v14  ;;  %v591_v35 = vadd.f32 %v2539_v34, %v2677_v8  ;;  %v1460_v9 = vmul.f32 %v1115_v63, %v2577_v25 }
  0xcd   : > { %3478 = vst [vmem:[#allocation34_spill] sm:$0xff] %v2762_v44  ;;  %v2778_v44 = vadd.f32 %v877_v53, %v844_v62  ;;  %v720_v48 = vmin.f32 %v3483_v49, 6.0  ;;  %v651_v62 = vadd.f32 %v2539_v34, %v2671_v2  ;;  %v630_v23 = vadd.f32 %v2539_v34, %v2689_v21 }
  0xce   : > { %3479 = vst [vmem:[#allocation35_spill] sm:$0xff] %v2765_v5  ;;  %v2781_v5 = vmul.f32 %v2592_v46, %v1066_v52  ;;  %v654_v45 = vadd.f32 %v2539_v34, %v653_v41  ;;  %v594_v53 = vadd.f32 %v2539_v34, %v593_v43  ;;  %v1293_v6 = vmul.f32 %v1277_v15, %v2552_v56  ;;  %v779_v52 = vld [vmem:[#allocation2 + $0x48] sm:$0xff] }
  0xcf   : > { %3481 = vst [vmem:[#allocation37_spill] sm:$0xff] %v2784_v22  ;;  %v656_v61 = vpop.f32.mrf.mxu3  ;;  %v696_v55 = vmax.f32 %v651_v62, 0.0  ;;  %v676_v2 = vmax.f32 %v591_v35, 0.0  ;;  %v633_v49 = vadd.f32 %v2539_v34, %v632_v60  ;;  %v1420_v63 = vmul.f32 %v1277_v15, %v2571_v14  ;;  %v1309_v35 = vld [vmem:[#allocation2 + $0x139] sm:$0xff]  ;;  %v812_v60 = vld [vmem:[#allocation2 + $0x49] sm:$0xff] }
  0xd0   : > { %3480 = vst [vmem:[#allocation36_spill] sm:$0xff] %v2781_v5  ;;  %v596_v8 = vpop.f32.mrf.mxu0  ;;  %v677_v42 = vmax.f32 %v594_v53, 0.0  ;;  %v635_v22 = vpop.f32.mrf.mxu1  ;;  %v657_v43 = vadd.f32 %v2539_v34, %v656_v61  ;;  %v925_v40 = vmul.f32 %v2571_v14, %v779_v52  ;;  %v1071_v54 = vmul.f32 %v2592_v46, %v779_v52 }
  0xd1   : > { %3482 = vst [vmem:[#allocation38_spill] sm:$0xff] %v2786_v4  ;;  %v689_v4 = vmax.f32 %v630_v23, 0.0  ;;  %v728_v21 = vmin.f32 %v696_v55, 6.0  ;;  %v708_v5 = vmin.f32 %v676_v2, 6.0  ;;  %v690_v41 = vmax.f32 %v633_v49, 0.0 }
  0xd2   : > { %754 = vst.msk [vmem:[#allocation2 + $0xe1] sm:$0xff] %vm374_vm2, %v720_v48  ;;  %v697_v48 = vmax.f32 %v654_v45, 0.0  ;;  %v597_v62 = vadd.f32 %v2539_v34, %v596_v8  ;;  %v709_v23 = vmin.f32 %v677_v42, 6.0  ;;  %v698_v45 = vmax.f32 %v657_v43, 0.0 }
  0xd3   : > { %v721_v50 = vmin.f32 %v689_v4, 6.0  ;;  %762 = vst.msk [vmem:[#allocation2 + $0x141] sm:$0xff] %vm374_vm2, %v728_v21  ;;  %v636_v53 = vadd.f32 %v2539_v34, %v635_v22  ;;  %v2812_v55 = vadd.f32 %v1022_v17, %v989_v1  ;;  %v1428_v61 = vadd.f32 %v1412_v7, %v2731_v10 }
  0xd4   : > { %v729_v0 = vmin.f32 %v697_v48, 6.0  ;;  %v1325_v2 = vmul.f32 %v1309_v35, %v2554_v57  ;;  %742 = vst.msk [vmem:[#allocation2 + $0x51] sm:$0xff] %vm374_vm2, %v708_v5  ;;  %v722_v4 = vmin.f32 %v690_v41, 6.0  ;;  %v2817_v49 = vadd.f32 %v1317_v32, %v1285_v36 }
  0xd5   : > { %755 = vst.msk [vmem:[#allocation2 + $0xf1] sm:$0xff] %vm374_vm2, %v721_v50  ;;  %v730_v8 = vmin.f32 %v698_v45, 6.0  ;;  %v678_v48 = vmax.f32 %v597_v62, 0.0  ;;  %v691_v21 = vmax.f32 %v636_v53, 0.0  ;;  %v1436_v42 = vadd.f32 %v1420_v63, %v2745_v51 }
  0xd6   : > { %v1468_v34 = vmul.f32 %v1309_v35, %v2577_v25  ;;  %v796_v22 = vmul.f32 %v2552_v56, %v779_v52  ;;  %v829_v10 = vmul.f32 %v2554_v57, %v812_v60  ;;  %763 = vst.msk [vmem:[#allocation2 + $0x151] sm:$0xff] %vm374_vm2, %v729_v0  ;;  %v2825_v17 = vadd.f32 %v1168_v58, %v1135_v37 }
  0xd7   : > { %v2828_v5 = vmul.f32 %v1277_v15, %v2592_v46  ;;  %v941_v50 = vadd.f32 %v925_v40, %v2772_v18  ;;  %v1087_v1 = vadd.f32 %v1071_v54, %v2774_v31  ;;  %743 = vst.msk [vmem:[#allocation2 + $0x61] sm:$0xff] %vm374_vm2, %v709_v23  ;;  %v1476_v51 = vadd.f32 %v1460_v9, %v1428_v61 }
  0xd8   : > { %3484 = vst [vmem:[#allocation39_spill] sm:$0xff] %v2825_v17  ;;  %v1341_v7 = vadd.f32 %v1325_v2, %v1293_v6  ;;  %v2834_v52 = vmul.f32 %v1309_v35, %v2581_v29  ;;  %v974_v58 = vmul.f32 %v2577_v25, %v812_v60  ;;  %v1120_v37 = vmul.f32 %v2581_v29, %v812_v60 }
  0xd9   : > { %3485 = vst [vmem:[#allocation40_spill] sm:$0xff] %v2828_v5  ;;  %v1067_v36 = vld [vmem:[#allocation2 + $0xe0] sm:$0xff]  ;;  %v710_v54 = vmin.f32 %v678_v48, 6.0  ;;  %v723_v40 = vmin.f32 %v691_v21, 6.0  ;;  %v1484_v18 = vadd.f32 %v1468_v34, %v1436_v42  ;;  %v2841_v31 = vadd.f32 %v829_v10, %v796_v22 }
  0xda   : > { %v1116_v32 = vld [vmem:[#allocation2 + $0xe1] sm:$0xff]  ;;  %3486 = vst [vmem:[#allocation41_spill] sm:$0xff] %v2834_v52  ;;  %v1413_v0 = vmul.f32 %v1067_v36, %v2571_v14  ;;  %v1286_v9 = vmul.f32 %v1067_v36, %v2552_v56  ;;  %v2845_v43 = vadd.f32 %v974_v58, %v941_v50  ;;  %v2847_v62 = vadd.f32 %v1120_v37, %v1087_v1 }
  0xdb   : > { %756 = vst.msk [vmem:[#allocation2 + $0xf9] sm:$0xff] %vm374_vm2, %v722_v4  ;;  %v1164_v15 = vld [vmem:[#allocation2 + $0xda] sm:$0xff]  ;;  %v1318_v6 = vmul.f32 %v1116_v32, %v2554_v57  ;;  %v1165_v35 = vld [vmem:[#allocation2 + $0xe2] sm:$0xff]  ;;  %v1461_v23 = vmul.f32 %v1116_v32, %v2577_v25  ;;  %v2853_v45 = vmul.f32 %v2592_v46, %v1067_v36  ;;  %v780_v34 = vld [vmem:[#allocation2 + $0x50] sm:$0xff] }
  0xdc   : > { %764 = vst.msk [vmem:[#allocation2 + $0x159] sm:$0xff] %vm374_vm2, %v730_v8  ;;  %v1278_v63 = vld [vmem:[#allocation2 + $0x140] sm:$0xff]  ;;  %v1429_v60 = vadd.f32 %v1413_v0, %v2736_v59  ;;  %v2860_v8 = vmul.f32 %v2581_v29, %v1116_v32  ;;  %v2863_v59 = vmul.f32 %v2583_v30, %v1164_v15  ;;  %v1365_v48 = vmul.f32 %v1164_v15, %v2560_v3  ;;  %v813_v22 = vld [vmem:[#allocation2 + $0x51] sm:$0xff] }
  0xdd   : > { %v1310_v41 = vld [vmem:[#allocation2 + $0x141] sm:$0xff]  ;;  %744 = vst.msk [vmem:[#allocation2 + $0x69] sm:$0xff] %vm374_vm2, %v710_v54  ;;  %v1294_v53 = vmul.f32 %v1278_v63, %v2552_v56  ;;  %v1421_v4 = vmul.f32 %v1278_v63, %v2571_v14  ;;  %v1508_v21 = vmul.f32 %v1164_v15, %v2579_v28  ;;  %v1334_v10 = vadd.f32 %v1318_v6, %v1286_v9  ;;  %v861_v54 = vld [vmem:[#allocation2 + $0x4a] sm:$0xff] }
  0xde   : > { %3487 = vst [vmem:[#allocation42_spill] sm:$0xff] %v2853_v45  ;;  %v1326_v61 = vmul.f32 %v1310_v41, %v2554_v57  ;;  %v1357_v2 = vld [vmem:[#allocation2 + $0x13a] sm:$0xff]  ;;  %v1358_v42 = vld [vmem:[#allocation2 + $0x142] sm:$0xff]  ;;  %v1366_v50 = vmul.f32 %v1165_v35, %v2560_v3  ;;  %v1469_v36 = vmul.f32 %v1310_v41, %v2577_v25  ;;  %v2871_v32 = vmul.f32 %v2583_v30, %v1165_v35 }
  0xdf   : > { %757 = vst.msk [vmem:[#allocation2 + $0x109] sm:$0xff] %vm374_vm2, %v723_v40  ;;  %v1437_v1 = vadd.f32 %v1421_v4, %v2752_v38  ;;  %v1477_v0 = vadd.f32 %v1461_v23, %v1429_v60  ;;  %v1509_v58 = vmul.f32 %v1165_v35, %v2579_v28  ;;  %v1373_v37 = vmul.f32 %v1357_v2, %v2560_v3 }
  0xe0   : > { %3488 = vst [vmem:[#allocation43_spill] sm:$0xff] %v2860_v8  ;;  %v1342_v40 = vadd.f32 %v1326_v61, %v1294_v53  ;;  %v1374_v15 = vmul.f32 %v1358_v42, %v2560_v3  ;;  %v797_v9 = vmul.f32 %v2552_v56, %v780_v34  ;;  %v830_v6 = vmul.f32 %v2554_v57, %v813_v22 }
  0xe1   : > { %3489 = vst [vmem:[#allocation44_spill] sm:$0xff] %v2863_v59  ;;  %v1381_v38 = vadd.f32 %v1365_v48, %v2817_v49  ;;  %v1524_v4 = vadd.f32 %v1508_v21, %v1476_v51  ;;  %v1516_v17 = vmul.f32 %v1357_v2, %v2579_v28  ;;  %v926_v52 = vmul.f32 %v2571_v14, %v780_v34  ;;  %v862_v59 = vld [vmem:[#allocation2 + $0x52] sm:$0xff] }
  0xe2   : > { %3490 = vst [vmem:[#allocation45_spill] sm:$0xff] %v2871_v32  ;;  %v2881_v60 = vadd.f32 %v1366_v50, %v1334_v10  ;;  %v1485_v35 = vadd.f32 %v1469_v36, %v1437_v1  ;;  %v1517_v23 = vmul.f32 %v1358_v42, %v2579_v28  ;;  %v878_v53 = vmul.f32 %v2560_v3, %v861_v54  ;;  %v1271_v50 = vld [vmem:[#allocation2 + $0xf0] sm:$0xff] }
  0xe3   : > { %v2885_v61 = vadd.f32 %v1509_v58, %v1477_v0  ;;  %v1389_v5 = vadd.f32 %v1373_v37, %v1341_v7  ;;  %v2888_v32 = vmul.f32 %v1278_v63, %v2592_v46  ;;  %v1072_v49 = vmul.f32 %v2592_v46, %v780_v34  ;;  %v1279_v0 = vld [vmem:[#allocation2 + $0x150] sm:$0xff] }
  0xe4   : > { %v2891_v51 = vadd.f32 %v1374_v15, %v1342_v40  ;;  %v2894_v48 = vmul.f32 %v1310_v41, %v2581_v29  ;;  %v846_v21 = vadd.f32 %v830_v6, %v797_v9  ;;  %v1023_v10 = vmul.f32 %v2579_v28, %v861_v54  ;;  %v1303_v40 = vld [vmem:[#allocation2 + $0xf1] sm:$0xff]  ;;  %v2913_v15 = vpop.f32.mrf.mxu0 }
  0xe5   : > { %3491 = vst [vmem:[#allocation46_spill] sm:$0xff] %v2888_v32  ;;  %v1532_v1 = vadd.f32 %v1516_v17, %v1484_v18  ;;  %v2898_v36 = vmul.f32 %v1357_v2, %v2583_v30  ;;  %v2901_v7 = vmul.f32 %v1358_v42, %v2583_v30  ;;  %v942_v63 = vadd.f32 %v926_v52, %v2778_v44 }
  0xe6   : > { %3492 = vst [vmem:[#allocation47_spill] sm:$0xff] %v2894_v48  ;;  %v2904_v34 = vadd.f32 %v1517_v23, %v1485_v35  ;;  %v879_v58 = vmul.f32 %v2560_v3, %v862_v59  ;;  %v894_v41 = vadd.f32 %v878_v53, %v2841_v31  ;;  %v975_v37 = vmul.f32 %v2577_v25, %v813_v22  ;;  %v1311_v53 = vld [vmem:[#allocation2 + $0x151] sm:$0xff] }
  0xe7   : > { %3493 = vst [vmem:[#allocation48_spill] sm:$0xff] %v2898_v36  ;;  %v1024_v17 = vmul.f32 %v2579_v28, %v862_v59  ;;  %v1088_v18 = vadd.f32 %v1072_v49, %v2812_v55  ;;  %v1414_v2 = vmul.f32 %v1271_v50, %v2571_v14  ;;  %v1557_v42 = vmul.f32 %v1271_v50, %v2592_v46  ;;  %v781_v49 = vld [vmem:[#allocation2 + $0x60] sm:$0xff]  ;;  %v2923_v36 = vpop.f32.mrf.mxu3 }
  0xe8   : > { %3494 = vst [vmem:[#allocation49_spill] sm:$0xff] %v2901_v7  ;;  %v2915_v44 = vadd.f32 %v879_v58, %v846_v21  ;;  %v1039_v52 = vadd.f32 %v1023_v10, %v2845_v43  ;;  %v1121_v9 = vmul.f32 %v2581_v29, %v813_v22  ;;  %v1422_v31 = vmul.f32 %v1279_v0, %v2571_v14 }
  0xe9   : > { %v991_v6 = vadd.f32 %v975_v37, %v942_v63  ;;  %v1169_v35 = vmul.f32 %v2583_v30, %v861_v54  ;;  %v1287_v23 = vmul.f32 %v1271_v50, %v2552_v56  ;;  %v1319_v55 = vmul.f32 %v1303_v40, %v2554_v57  ;;  %v814_v50 = vld [vmem:[#allocation2 + $0x61] sm:$0xff] }
  0xea   : > { %v1170_v21 = vmul.f32 %v2583_v30, %v862_v59  ;;  %v1462_v58 = vmul.f32 %v1303_v40, %v2577_v25  ;;  %v1605_v43 = vmul.f32 %v1303_v40, %v2581_v29  ;;  %v1565_v22 = vmul.f32 %v1279_v0, %v2592_v46  ;;  %v1272_v59 = vld [vmem:[#allocation2 + $0xf8] sm:$0xff] }
  0xeb   : > { %v1137_v10 = vadd.f32 %v1121_v9, %v1088_v18  ;;  %v1430_v63 = vadd.f32 %v1414_v2, %v1381_v38  ;;  %v1573_v37 = vadd.f32 %v1557_v42, %v1524_v4  ;;  %v1295_v54 = vmul.f32 %v1279_v0, %v2552_v56  ;;  %v1304_v2 = vld [vmem:[#allocation2 + $0xf9] sm:$0xff] }
  0xec   : > { %v1327_v7 = vmul.f32 %v1311_v53, %v2554_v57  ;;  %v1438_v48 = vadd.f32 %v1422_v31, %v1389_v5  ;;  %v1470_v32 = vmul.f32 %v1311_v53, %v2577_v25  ;;  %v927_v8 = vmul.f32 %v2571_v14, %v781_v49 }
  0xed   : > { %v2933_v45 = vadd.f32 %v1024_v17, %v991_v6  ;;  %v2936_v40 = vadd.f32 %v1169_v35, %v2847_v62  ;;  %v1335_v47 = vadd.f32 %v1319_v55, %v1287_v23  ;;  %v1073_v38 = vmul.f32 %v2592_v46, %v781_v49  ;;  %v1351_v17 = vld [vmem:[#allocation2 + $0xf2] sm:$0xff]  ;;  %v1352_v55 = vld [vmem:[#allocation2 + $0xfa] sm:$0xff] }
  0xee   : > { %v1581_v4 = vadd.f32 %v1565_v22, %v1532_v1  ;;  %v1613_v0 = vmul.f32 %v1311_v53, %v2581_v29  ;;  %v798_v18 = vmul.f32 %v2552_v56, %v781_v49  ;;  %v831_v5 = vmul.f32 %v2554_v57, %v814_v50 }
  0xef   : > { %3495 = vst [vmem:[#allocation50_spill] sm:$0xff] %v2936_v40  ;;  %v2942_v42 = vadd.f32 %v1170_v21, %v1137_v10  ;;  %v1478_v9 = vadd.f32 %v1462_v58, %v1430_v63  ;;  %v1621_v31 = vadd.f32 %v1605_v43, %v1573_v37  ;;  %v1415_v6 = vmul.f32 %v1272_v59, %v2571_v14  ;;  %v1280_v10 = vld [vmem:[#allocation2 + $0x158] sm:$0xff]  ;;  %v2951_v43 = vpop.f32.mrf.mxu0 }
  0xf0   : > { %v1343_v62 = vadd.f32 %v1327_v7, %v1295_v54  ;;  %v2945_v35 = vadd.f32 %v1470_v32, %v1438_v48  ;;  %v943_v23 = vadd.f32 %v927_v8, %v894_v41  ;;  %v976_v1 = vmul.f32 %v2577_v25, %v814_v50  ;;  %v1312_v58 = vld [vmem:[#allocation2 + $0x159] sm:$0xff]  ;;  %v2961_v54 = vpop.f32.mrf.mxu3 }
  0xf1   : > { %3496 = vst [vmem:[#allocation51_spill] sm:$0xff] %v2942_v42  ;;  %v1089_v53 = vadd.f32 %v1073_v38, %v1039_v52  ;;  %v1288_v49 = vmul.f32 %v1272_v59, %v2552_v56  ;;  %v1320_v22 = vmul.f32 %v1304_v2, %v2554_v57  ;;  %v1558_v21 = vmul.f32 %v1272_v59, %v2592_v46  ;;  %v1360_v40 = vld [vmem:[#allocation2 + $0x15a] sm:$0xff] }
  0xf2   : > { %v1629_v63 = vadd.f32 %v1613_v0, %v1581_v4  ;;  %v2953_v37 = vadd.f32 %v831_v5, %v798_v18  ;;  %v1122_v32 = vmul.f32 %v2581_v29, %v814_v50  ;;  %v1367_v8 = vmul.f32 %v1351_v17, %v2560_v3 }
  0xf3   : > { %v1368_v48 = vmul.f32 %v1352_v55, %v2560_v3  ;;  %v1431_v7 = vadd.f32 %v1415_v6, %v2881_v60  ;;  %v1463_v41 = vmul.f32 %v1304_v2, %v2577_v25  ;;  %v1606_v52 = vmul.f32 %v1304_v2, %v2581_v29  ;;  %v1359_v6 = vld [vmem:[#allocation2 + $0x152] sm:$0xff] }
  0xf4   : > { %v1574_v59 = vadd.f32 %v1558_v21, %v2885_v61  ;;  %v1296_v38 = vmul.f32 %v1280_v10, %v2552_v56  ;;  %v1328_v4 = vmul.f32 %v1312_v58, %v2554_v57  ;;  %v1423_v50 = vmul.f32 %v1280_v10, %v2571_v14 }
  0xf5   : > { %v2967_v0 = vadd.f32 %v976_v1, %v943_v23  ;;  %v2969_v18 = vadd.f32 %v1122_v32, %v1089_v53  ;;  %v1336_v5 = vadd.f32 %v1320_v22, %v1288_v49  ;;  %v1510_v60 = vmul.f32 %v1351_v17, %v2579_v28 }
  0xf6   : > { %v1383_v2 = vadd.f32 %v1367_v8, %v1335_v47  ;;  %v1439_v42 = vadd.f32 %v1423_v50, %v2891_v51  ;;  %v1471_v61 = vmul.f32 %v1312_v58, %v2577_v25  ;;  %v1566_v21 = vmul.f32 %v1280_v10, %v2592_v46  ;;  %v782_v47 = vld [vmem:[#allocation2 + $0x68] sm:$0xff] }
  0xf7   : > { %v1479_v39 = vadd.f32 %v1463_v41, %v1431_v7  ;;  %v1511_v33 = vmul.f32 %v1352_v55, %v2579_v28  ;;  %v1653_v23 = vmul.f32 %v1351_v17, %v2583_v30  ;;  %v1654_v1 = vmul.f32 %v1352_v55, %v2583_v30  ;;  %v815_v8 = vld [vmem:[#allocation2 + $0x69] sm:$0xff] }
  0xf8   : > { %v1622_v53 = vadd.f32 %v1606_v52, %v1574_v59  ;;  %v1344_v49 = vadd.f32 %v1328_v4, %v1296_v38  ;;  %v1375_v22 = vmul.f32 %v1359_v6, %v2560_v3  ;;  %v1376_v32 = vmul.f32 %v1360_v40, %v2560_v3  ;;  %v863_v41 = vld [vmem:[#allocation2 + $0x62] sm:$0xff] }
  0xf9   : > { %v1384_v51 = vadd.f32 %v1368_v48, %v1336_v5  ;;  %v2980_v50 = vadd.f32 %v1510_v60, %v1478_v9  ;;  %v1518_v10 = vmul.f32 %v1359_v6, %v2579_v28  ;;  %v1661_v7 = vmul.f32 %v1359_v6, %v2583_v30  ;;  %v1273_v4 = vld [vmem:[#allocation2 + $0x108] sm:$0xff]  ;;  %v2993_v5 = vpop.f32.mrf.mxu0 }
  0xfa   : > { %v1487_v13 = vadd.f32 %v1471_v61, %v1439_v42  ;;  %v1519_v17 = vmul.f32 %v1360_v40, %v2579_v28  ;;  %v1582_v55 = vadd.f32 %v1566_v21, %v2904_v34  ;;  %v1614_v52 = vmul.f32 %v1312_v58, %v2581_v29  ;;  %v864_v34 = vld [vmem:[#allocation2 + $0x6a] sm:$0xff] }
  0xfb   : > { %v2987_v59 = vadd.f32 %v1511_v33, %v1479_v39  ;;  %v2989_v38 = vadd.f32 %v1653_v23, %v1621_v31  ;;  %v799_v48 = vmul.f32 %v2552_v56, %v782_v47  ;;  %v832_v9 = vmul.f32 %v2554_v57, %v815_v8  ;;  %v1274_v33 = vld [vmem:[#allocation2 + $0x110] sm:$0xff] }
  0xfc   : > { %v2995_v60 = vadd.f32 %v1654_v1, %v1622_v53  ;;  %v2997_v42 = vadd.f32 %v1375_v22, %v1343_v62  ;;  %v2999_v6 = vadd.f32 %v1376_v32, %v1344_v49  ;;  %v880_v58 = vmul.f32 %v2560_v3, %v863_v41  ;;  %v1305_v39 = vld [vmem:[#allocation2 + $0x109] sm:$0xff]  ;;  %v665_v1 = vpop.f32.mrf.mxu3 }
  0xfd   : > { %3497 = vst [vmem:[#allocation52_spill] sm:$0xff] %v2989_v38  ;;  %v3003_v31 = vadd.f32 %v1518_v10, %v2945_v35  ;;  %v1662_v61 = vmul.f32 %v1360_v40, %v2583_v30  ;;  %v3006_v21 = vadd.f32 %v1661_v7, %v1629_v63  ;;  %v928_v23 = vmul.f32 %v2571_v14, %v782_v47  ;;  %v3020_v63 = vld [vmem:[#allocation2 + $0x10a] sm:$0xff] }
  0xfe   : > { %3498 = vst [vmem:[#allocation53_spill] sm:$0xff] %v2995_v60  ;;  %v3009_v53 = vadd.f32 %v1519_v17, %v1487_v13  ;;  %v1630_v62 = vadd.f32 %v1614_v52, %v1582_v55  ;;  %v1074_v49 = vmul.f32 %v2592_v46, %v782_v47  ;;  %v1289_v22 = vmul.f32 %v1273_v4, %v2552_v56 }
  0xff   : > { %3499 = vst [vmem:[#allocation54_spill] sm:$0xff] %v2999_v6  ;;  %v3013_v32 = vadd.f32 %v832_v9, %v799_v48  ;;  %v3016_v38 = vmul.f32 %v2560_v3, %v864_v34  ;;  %v1290_v35 = vmul.f32 %v1274_v33, %v2552_v56  ;;  %v1321_v40 = vmul.f32 %v1305_v39, %v2554_v57 }
 0x100   : > { %3500 = vst [vmem:[#allocation55_spill] sm:$0xff] %v3006_v21  ;;  %v3023_v10 = vadd.f32 %v880_v58, %v2953_v37  ;;  %v977_v13 = vmul.f32 %v2577_v25, %v815_v8  ;;  %v1416_v47 = vmul.f32 %v1273_v4, %v2571_v14  ;;  %v1417_v7 = vmul.f32 %v1274_v33, %v2571_v14 }
 0x101   : > { %3501 = vst [vmem:[#allocation56_spill] sm:$0xff] %v3009_v53  ;;  %v944_v17 = vadd.f32 %v928_v23, %v2915_v44  ;;  %v3030_v55 = vmul.f32 %v2579_v28, %v863_v41  ;;  %v1337_v52 = vadd.f32 %v1321_v40, %v1289_v22  ;;  %v1338_v48 = vadd.f32 %v2623_v19, %v1290_v35  ;;  %v608_v6 = vpop.f32.mrf.mxu0 }
 0x102   : > { %v3033_v9 = vadd.f32 %v1662_v61, %v1630_v62  ;;  %v3036_v60 = vmul.f32 %v2579_v28, %v864_v34  ;;  %v1090_v37 = vadd.f32 %v1074_v49, %v2933_v45  ;;  %v1369_v58 = vmul.f32 %v3020_v63, %v2560_v3 }
 0x103   : > { %v1432_v21 = vadd.f32 %v1416_v47, %v1383_v2  ;;  %v1433_v53 = vadd.f32 %v1417_v7, %v1384_v51  ;;  %v1464_v44 = vmul.f32 %v1305_v39, %v2577_v25  ;;  %v1559_v23 = vmul.f32 %v1273_v4, %v2592_v46  ;;  %v2244_v2 = vld [vmem:[%s3444_s2] ss:$0 sm:$0xff] }
 0x104   : > { %v1123_v22 = vmul.f32 %v2581_v29, %v815_v8  ;;  %v1171_v19 = vmul.f32 %v2583_v30, %v863_v41  ;;  %v1385_v61 = vadd.f32 %v1369_v58, %v1337_v52  ;;  %v1386_v62 = vadd.f32 %v2626_v20, %v1338_v48  ;;  %v668_v47 = vpop.f32.mrf.mxu3 }
 0x105   : > { %v993_v35 = vadd.f32 %v977_v13, %v944_v17  ;;  %v1172_v45 = vmul.f32 %v2583_v30, %v864_v34  ;;  %v1560_v49 = vmul.f32 %v1274_v33, %v2592_v46  ;;  %v660_v51 = vadd.f32 %v2244_v2, %v2923_v36 }
 0x106   : > { %v1139_v4 = vadd.f32 %v1123_v22, %v1090_v37  ;;  %v1512_v8 = vmul.f32 %v3020_v63, %v2579_v28  ;;  %v1607_v41 = vmul.f32 %v1305_v39, %v2581_v29  ;;  %v600_v40 = vadd.f32 %v2244_v2, %v2913_v15 }
 0x107   : > { %v1480_v20 = vadd.f32 %v1464_v44, %v1432_v21  ;;  %v1481_v13 = vadd.f32 %v2631_v26, %v1433_v53  ;;  %v1575_v34 = vadd.f32 %v1559_v23, %v2980_v50  ;;  %v699_v33 = vmax.f32 %v660_v51, 0.0 }
 0x108   : > { %v1434_v7 = vadd.f32 %v2680_v11, %v1385_v61  ;;  %v1435_v17 = vadd.f32 %v2734_v24, %v1386_v62  ;;  %v679_v36 = vmax.f32 %v600_v40, 0.0  ;;  %v663_v52 = vadd.f32 %v2244_v2, %v2961_v54 }
 0x109   : > { %v1576_v48 = vadd.f32 %v1560_v49, %v2987_v59  ;;  %v731_v37 = vmin.f32 %v699_v33, 6.0  ;;  %v603_v39 = vadd.f32 %v2244_v2, %v2951_v43  ;;  %v666_v15 = vadd.f32 %v2244_v2, %v665_v1  ;;  %v611_v23 = vpop.f32.mrf.mxu0 }
 0x10a   : > { %v711_v21 = vmin.f32 %v679_v36, 6.0  ;;  %v700_v58 = vmax.f32 %v663_v52, 0.0  ;;  %v606_v26 = vadd.f32 %v2244_v2, %v2993_v5  ;;  %v669_v50 = vadd.f32 %v2244_v2, %v668_v47 }
 0x10b   : > { %v1528_v53 = vadd.f32 %v1512_v8, %v1480_v20  ;;  %765 = vst.msk [vmem:[#allocation2 + $0x169] sm:$0xff] %vm374_vm2, %v731_v37  ;;  %v680_v11 = vmax.f32 %v603_v39, 0.0  ;;  %v701_v44 = vmax.f32 %v666_v15, 0.0  ;;  %v609_v24 = vadd.f32 %v2244_v2, %v608_v6 }
 0x10c   : > { %745 = vst.msk [vmem:[#allocation2 + $0x79] sm:$0xff] %vm374_vm2, %v711_v21  ;;  %v732_v54 = vmin.f32 %v700_v58, 6.0  ;;  %v681_v59 = vmax.f32 %v606_v26, 0.0  ;;  %v702_v22 = vmax.f32 %v669_v50, 0.0  ;;  %v612_v61 = vadd.f32 %v2244_v2, %v611_v23 }
 0x10d   : > { %v1623_v43 = vadd.f32 %v1607_v41, %v1575_v34  ;;  %v712_v1 = vmin.f32 %v680_v11, 6.0  ;;  %v733_v62 = vmin.f32 %v701_v44, 6.0  ;;  %v682_v49 = vmax.f32 %v609_v24, 0.0  ;;  %v1555_v41 = vld [vmem:[#allocation2 + $0x198] sm:$0xff]  ;;  %v1556_v34 = vld [vmem:[#allocation2 + $0x1a0] sm:$0xff] }
 0x10e   : > { %v1482_v5 = vadd.f32 %v2683_v12, %v1434_v7  ;;  %766 = vst.msk [vmem:[#allocation2 + $0x171] sm:$0xff] %vm374_vm2, %v732_v54  ;;  %v713_v51 = vmin.f32 %v681_v59, 6.0  ;;  %v734_v8 = vmin.f32 %v702_v22, 6.0  ;;  %v683_v40 = vmax.f32 %v612_v61, 0.0  ;;  %v3503_v7 = vld [vmem:[#allocation14_spill] sm:$0xff] }
 0x10f   : > { %v3070_v6 = vadd.f32 %v3016_v38, %v3013_v32  ;;  %v1041_v20 = vadd.f32 %v3030_v55, %v2967_v0  ;;  %v3075_v2 = vadd.f32 %v1171_v19, %v2969_v18  ;;  %746 = vst.msk [vmem:[#allocation2 + $0x81] sm:$0xff] %vm374_vm2, %v712_v1  ;;  %v714_v12 = vmin.f32 %v682_v49, 6.0  ;;  %v3502_v55 = vld [vmem:[#allocation20_spill] sm:$0xff] }
 0x110   : > { %v3079_v33 = vadd.f32 %v3036_v60, %v993_v35  ;;  %v3081_v47 = vadd.f32 %v1172_v45, %v1139_v4  ;;  %v1655_v38 = vmul.f32 %v3020_v63, %v2583_v30  ;;  %767 = vst.msk [vmem:[#allocation2 + $0x181] sm:$0xff] %vm374_vm2, %v733_v62  ;;  %v715_v32 = vmin.f32 %v683_v40, 6.0  ;;  %v3504_v35 = vld [vmem:[#allocation30_spill] sm:$0xff] }
 0x111   : > { %v3087_v0 = vadd.f32 %v2739_v16, %v1435_v17  ;;  %v3090_v18 = vadd.f32 %v2634_v27, %v1481_v13  ;;  %v3093_v19 = vadd.f32 %v3502_v55, %v1528_v53  ;;  %v3096_v60 = vadd.f32 %v3503_v7, %v1576_v48  ;;  %747 = vst.msk [vmem:[#allocation2 + $0x91] sm:$0xff] %vm374_vm2, %v713_v51 }
 0x112   : > { %v3100_v45 = vadd.f32 %v3504_v35, %v1482_v5  ;;  %v3102_v63 = vadd.f32 %v1655_v38, %v1623_v43  ;;  %v1281_v4 = vld [vmem:[#allocation2 + $0x168] sm:$0xff]  ;;  %768 = vst.msk [vmem:[#allocation2 + $0x189] sm:$0xff] %vm374_vm2, %v734_v8  ;;  %v3106_v27 = vmul.f32 %v1555_v41, %v2592_v46  ;;  %v3109_v16 = vmul.f32 %v1556_v34, %v2592_v46 }
 0x113   : > { %v1313_v36 = vld [vmem:[#allocation2 + $0x169] sm:$0xff]  ;;  %v1297_v13 = vmul.f32 %v1281_v4, %v2552_v56  ;;  %v1424_v52 = vmul.f32 %v1281_v4, %v2571_v14  ;;  %v783_v37 = vld [vmem:[#allocation2 + $0x78] sm:$0xff]  ;;  %748 = vst.msk [vmem:[#allocation2 + $0x99] sm:$0xff] %vm374_vm2, %v714_v12  ;;  %v1567_v15 = vmul.f32 %v1281_v4, %v2592_v46 }
 0x114   : > { %v1329_v17 = vmul.f32 %v1313_v36, %v2554_v57  ;;  %v1472_v48 = vmul.f32 %v1313_v36, %v2577_v25  ;;  %v816_v39 = vld [vmem:[#allocation2 + $0x79] sm:$0xff]  ;;  %v1615_v21 = vmul.f32 %v1313_v36, %v2581_v29  ;;  %v800_v58 = vmul.f32 %v2552_v56, %v783_v37  ;;  %749 = vst.msk [vmem:[#allocation2 + $0xa9] sm:$0xff] %vm374_vm2, %v715_v32 }
 0x115   : > { %v833_v26 = vmul.f32 %v2554_v57, %v816_v39  ;;  %v1440_v53 = vadd.f32 %v1424_v52, %v2997_v42  ;;  %v929_v11 = vmul.f32 %v2571_v14, %v783_v37  ;;  %v978_v44 = vmul.f32 %v2577_v25, %v816_v39  ;;  %v1282_v24 = vld [vmem:[#allocation2 + $0x170] sm:$0xff] }
 0x116   : > { %v1345_v50 = vadd.f32 %v1329_v17, %v1297_v13  ;;  %v1314_v23 = vld [vmem:[#allocation2 + $0x171] sm:$0xff]  ;;  %v1583_v59 = vadd.f32 %v1567_v15, %v3003_v31  ;;  %v1075_v61 = vmul.f32 %v2592_v46, %v783_v37  ;;  %v1124_v43 = vmul.f32 %v2581_v29, %v816_v39  ;;  %v784_v32 = vld [vmem:[#allocation2 + $0x80] sm:$0xff] }
 0x117   : > { %v1361_v54 = vld [vmem:[#allocation2 + $0x16a] sm:$0xff]  ;;  %v849_v22 = vadd.f32 %v833_v26, %v800_v58  ;;  %v1362_v1 = vld [vmem:[#allocation2 + $0x172] sm:$0xff]  ;;  %v1488_v62 = vadd.f32 %v1472_v48, %v1440_v53  ;;  %v945_v49 = vadd.f32 %v929_v11, %v3023_v10  ;;  %v1298_v42 = vmul.f32 %v1282_v24, %v2552_v56  ;;  %v817_v4 = vld [vmem:[#allocation2 + $0x81] sm:$0xff] }
 0x118   : > { %v1330_v5 = vmul.f32 %v1314_v23, %v2554_v57  ;;  %v1631_v51 = vadd.f32 %v1615_v21, %v1583_v59  ;;  %v1091_v8 = vadd.f32 %v1075_v61, %v1041_v20  ;;  %v1377_v40 = vmul.f32 %v1361_v54, %v2560_v3  ;;  %v865_v36 = vld [vmem:[#allocation2 + $0x7a] sm:$0xff]  ;;  %v866_v37 = vld [vmem:[#allocation2 + $0x82] sm:$0xff] }
 0x119   : > { %v1378_v41 = vmul.f32 %v1362_v1, %v2560_v3  ;;  %v994_v31 = vadd.f32 %v978_v44, %v945_v49  ;;  %v1425_v12 = vmul.f32 %v1282_v24, %v2571_v14  ;;  %v1473_v38 = vmul.f32 %v1314_v23, %v2577_v25  ;;  %v3505_v13 = vld [vmem:[#allocation54_spill] sm:$0xff] }
 0x11a   : > { %v1346_v34 = vadd.f32 %v1330_v5, %v1298_v42  ;;  %v1140_v55 = vadd.f32 %v1124_v43, %v1091_v8  ;;  %v1393_v7 = vadd.f32 %v1377_v40, %v1345_v50  ;;  %v1520_v10 = vmul.f32 %v1361_v54, %v2579_v28  ;;  %v3506_v50 = vld [vmem:[#allocation56_spill] sm:$0xff]  ;;  %v1458_v40 = vld [vmem:[#allocation2 + $0x181] sm:$0xff] }
 0x11b   : > { %v1521_v35 = vmul.f32 %v1362_v1, %v2579_v28  ;;  %v1441_v17 = vadd.f32 %v1425_v12, %v3505_v13  ;;  %v1568_v52 = vmul.f32 %v1282_v24, %v2592_v46  ;;  %v1616_v48 = vmul.f32 %v1314_v23, %v2581_v29 }
 0x11c   : > { %v3136_v20 = vadd.f32 %v1378_v41, %v1346_v34  ;;  %v1536_v39 = vadd.f32 %v1520_v10, %v1488_v62  ;;  %v1663_v15 = vmul.f32 %v1361_v54, %v2583_v30  ;;  %v1664_v21 = vmul.f32 %v1362_v1, %v2583_v30  ;;  %v785_v10 = vld [vmem:[#allocation2 + $0x90] sm:$0xff] }
 0x11d   : > { %v801_v58 = vmul.f32 %v2552_v56, %v784_v32  ;;  %v1489_v26 = vadd.f32 %v1473_v38, %v1441_v17  ;;  %v1584_v53 = vadd.f32 %v1568_v52, %v3506_v50  ;;  %v834_v11 = vmul.f32 %v2554_v57, %v817_v4  ;;  %v818_v17 = vld [vmem:[#allocation2 + $0x91] sm:$0xff]  ;;  %v1459_v50 = vld [vmem:[#allocation2 + $0x189] sm:$0xff] }
 0x11e   : > { %v882_v44 = vmul.f32 %v2560_v3, %v865_v36  ;;  %v3147_v59 = vadd.f32 %v1663_v15, %v1631_v51  ;;  %v883_v24 = vmul.f32 %v2560_v3, %v866_v37  ;;  %v930_v23 = vmul.f32 %v2571_v14, %v784_v32  ;;  %v1410_v51 = vld [vmem:[#allocation2 + $0x180] sm:$0xff] }
 0x11f   : > { %v979_v61 = vmul.f32 %v2577_v25, %v817_v4  ;;  %v1537_v54 = vadd.f32 %v1521_v35, %v1489_v26  ;;  %v1632_v43 = vadd.f32 %v1616_v48, %v1584_v53  ;;  %v850_v1 = vadd.f32 %v834_v11, %v801_v58  ;;  %v1411_v26 = vld [vmem:[#allocation2 + $0x188] sm:$0xff] }
 0x120   : > { %v898_v62 = vadd.f32 %v882_v44, %v849_v22  ;;  %v946_v49 = vadd.f32 %v930_v23, %v3070_v6  ;;  %v1027_v42 = vmul.f32 %v2579_v28, %v865_v36  ;;  %v1028_v5 = vmul.f32 %v2579_v28, %v866_v37  ;;  %v1506_v53 = vld [vmem:[#allocation2 + $0x182] sm:$0xff] }
 0x121   : > { %v1076_v8 = vmul.f32 %v2592_v46, %v784_v32  ;;  %v3156_v41 = vadd.f32 %v1664_v21, %v1632_v43  ;;  %v3158_v34 = vadd.f32 %v883_v24, %v850_v1  ;;  %v1125_v12 = vmul.f32 %v2581_v29, %v817_v4 }
 0x122   : > { %v1173_v38 = vmul.f32 %v2583_v30, %v865_v36  ;;  %v995_v22 = vadd.f32 %v979_v61, %v946_v49  ;;  %v1043_v35 = vadd.f32 %v1027_v42, %v994_v31  ;;  %v1174_v13 = vmul.f32 %v2583_v30, %v866_v37  ;;  %v1507_v61 = vld [vmem:[#allocation2 + $0x18a] sm:$0xff] }
 0x123   : > { %v1092_v6 = vadd.f32 %v1076_v8, %v3079_v33  ;;  %v1426_v32 = vmul.f32 %v1410_v51, %v2571_v14  ;;  %v1474_v48 = vmul.f32 %v1458_v40, %v2577_v25  ;;  %v1569_v15 = vmul.f32 %v1410_v51, %v2592_v46  ;;  %v786_v51 = vld [vmem:[#allocation2 + $0x98] sm:$0xff] }
 0x124   : > { %v3164_v52 = vadd.f32 %v1173_v38, %v1140_v55  ;;  %v3169_v21 = vadd.f32 %v1028_v5, %v995_v22  ;;  %v1617_v36 = vmul.f32 %v1458_v40, %v2581_v29  ;;  %v802_v31 = vmul.f32 %v2552_v56, %v785_v10  ;;  %v819_v40 = vld [vmem:[#allocation2 + $0x99] sm:$0xff] }
 0x125   : > { %v1141_v4 = vadd.f32 %v1125_v12, %v1092_v6  ;;  %v1442_v58 = vadd.f32 %v1426_v32, %v1393_v7  ;;  %v1585_v33 = vadd.f32 %v1569_v15, %v1536_v39  ;;  %v835_v37 = vmul.f32 %v2554_v57, %v818_v17  ;;  %v867_v6 = vld [vmem:[#allocation2 + $0x92] sm:$0xff]  ;;  %v868_v32 = vld [vmem:[#allocation2 + $0x9a] sm:$0xff] }
 0x126   : > { %v931_v55 = vmul.f32 %v2571_v14, %v785_v10  ;;  %v980_v44 = vmul.f32 %v2577_v25, %v818_v17  ;;  %v1077_v24 = vmul.f32 %v2592_v46, %v785_v10  ;;  %v1126_v23 = vmul.f32 %v2581_v29, %v818_v17 }
 0x127   : > { %v3175_v11 = vadd.f32 %v1174_v13, %v1141_v4  ;;  %v1490_v43 = vadd.f32 %v1474_v48, %v1442_v58  ;;  %v1633_v1 = vadd.f32 %v1617_v36, %v1585_v33  ;;  %v851_v7 = vadd.f32 %v835_v37, %v802_v31 }
 0x128   : > { %v947_v39 = vadd.f32 %v931_v55, %v898_v62  ;;  %v1093_v49 = vadd.f32 %v1077_v24, %v1043_v35  ;;  %v1427_v42 = vmul.f32 %v1411_v26, %v2571_v14  ;;  %v1475_v5 = vmul.f32 %v1459_v50, %v2577_v25 }
 0x129   : > { %v1522_v8 = vmul.f32 %v1506_v53, %v2579_v28  ;;  %v1523_v38 = vmul.f32 %v1507_v61, %v2579_v28  ;;  %v1570_v10 = vmul.f32 %v1411_v26, %v2592_v46  ;;  %v1618_v22 = vmul.f32 %v1459_v50, %v2581_v29 }
 0x12a   : > { %v996_v12 = vadd.f32 %v980_v44, %v947_v39  ;;  %v1142_v13 = vadd.f32 %v1126_v23, %v1093_v49  ;;  %v1443_v62 = vadd.f32 %v1427_v42, %v3136_v20  ;;  %v1665_v17 = vmul.f32 %v1506_v53, %v2583_v30  ;;  %v787_v23 = vld [vmem:[#allocation2 + $0xa8] sm:$0xff]  ;;  %v788_v39 = vld [vmem:[#allocation2 + $0xb0] sm:$0xff] }
 0x12b   : > { %v1538_v35 = vadd.f32 %v1522_v8, %v1490_v43  ;;  %v1586_v48 = vadd.f32 %v1570_v10, %v1537_v54  ;;  %v1666_v15 = vmul.f32 %v1507_v61, %v2583_v30  ;;  %v803_v4 = vmul.f32 %v2552_v56, %v786_v51  ;;  %v820_v49 = vld [vmem:[#allocation2 + $0xa9] sm:$0xff] }
 0x12c   : > { %v836_v36 = vmul.f32 %v2554_v57, %v819_v40  ;;  %v1491_v31 = vadd.f32 %v1475_v5, %v1443_v62  ;;  %v3194_v33 = vadd.f32 %v1665_v17, %v1633_v1  ;;  %v884_v37 = vmul.f32 %v2560_v3, %v867_v6  ;;  %v869_v42 = vld [vmem:[#allocation2 + $0xaa] sm:$0xff] }
 0x12d   : > { %v3192_v58 = vadd.f32 %v3106_v27, %v1538_v35  ;;  %v1634_v20 = vadd.f32 %v1618_v22, %v1586_v48  ;;  %v885_v26 = vmul.f32 %v2560_v3, %v868_v32  ;;  %v932_v54 = vmul.f32 %v2571_v14, %v786_v51 }
 0x12e   : > { %v852_v55 = vadd.f32 %v836_v36, %v803_v4  ;;  %v1539_v50 = vadd.f32 %v1523_v38, %v1491_v31  ;;  %v900_v53 = vadd.f32 %v884_v37, %v851_v7  ;;  %v981_v44 = vmul.f32 %v2577_v25, %v819_v40 }
 0x12f   : > { %v1029_v24 = vmul.f32 %v2579_v28, %v867_v6  ;;  %v1682_v61 = vadd.f32 %v1666_v15, %v1634_v20  ;;  %v948_v43 = vadd.f32 %v932_v54, %v3158_v34  ;;  %v1030_v1 = vmul.f32 %v2579_v28, %v868_v32  ;;  %v3508_v20 = vld [vmem:[#allocation9_spill] sm:$0xff] }
 0x130   : > { %v901_v27 = vadd.f32 %v885_v26, %v852_v55  ;;  %v1588_v5 = vadd.f32 %v3109_v16, %v1539_v50  ;;  %v1078_v38 = vmul.f32 %v2592_v46, %v786_v51  ;;  %v1127_v7 = vmul.f32 %v2581_v29, %v819_v40  ;;  %v3509_v50 = vld [vmem:[#allocation10_spill] sm:$0xff] }
 0x131   : > { %v1045_v8 = vadd.f32 %v1029_v24, %v996_v12  ;;  %v997_v10 = vadd.f32 %v981_v44, %v948_v43  ;;  %v1175_v22 = vmul.f32 %v2583_v30, %v867_v6  ;;  %v1176_v62 = vmul.f32 %v2583_v30, %v868_v32  ;;  %v3507_v32 = vld [vmem:[#allocation8_spill] sm:$0xff] }
 0x132   : > { %v804_v35 = vmul.f32 %v2552_v56, %v787_v23  ;;  %v1094_v34 = vadd.f32 %v1078_v38, %v3169_v21  ;;  %v805_v17 = vmul.f32 %v2552_v56, %v788_v39  ;;  %v837_v48 = vmul.f32 %v2554_v57, %v820_v49 }
 0x133   : > { %v886_v16 = vmul.f32 %v2560_v3, %v869_v42  ;;  %v1046_v12 = vadd.f32 %v1030_v1, %v997_v10  ;;  %v3213_v15 = vadd.f32 %v1175_v22, %v1142_v13  ;;  %v933_v51 = vmul.f32 %v2571_v14, %v787_v23  ;;  %v3512_v22 = vld [vmem:[#allocation11_spill] sm:$0xff] }
 0x134   : > { %v934_v40 = vmul.f32 %v2571_v14, %v788_v39  ;;  %v1143_v6 = vadd.f32 %v1127_v7, %v1094_v34  ;;  %v853_v4 = vadd.f32 %v837_v48, %v804_v35  ;;  %v854_v36 = vadd.f32 %v3507_v32, %v805_v17  ;;  %v1604_v14 = vld [vmem:[#allocation2 + $0x1a1] sm:$0xff]  ;;  %v1603_v7 = vld [vmem:[#allocation2 + $0x199] sm:$0xff]  ;;  %v3515_v48 = vld [vmem:[#allocation12_spill] sm:$0xff] }
 0x135   : > { %v982_v31 = vmul.f32 %v2577_v25, %v820_v49  ;;  %v949_v21 = vadd.f32 %v933_v51, %v900_v53  ;;  %v1031_v56 = vmul.f32 %v2579_v28, %v869_v42  ;;  %v1079_v57 = vmul.f32 %v2592_v46, %v787_v23  ;;  %v1652_v53 = vld [vmem:[#allocation2 + $0x1a2] sm:$0xff]  ;;  %v1651_v35 = vld [vmem:[#allocation2 + $0x19a] sm:$0xff] }
 0x136   : > { %v950_v37 = vadd.f32 %v934_v40, %v901_v27  ;;  %v3221_v3 = vadd.f32 %v1176_v62, %v1143_v6  ;;  %v902_v13 = vadd.f32 %v886_v16, %v853_v4  ;;  %v903_v55 = vadd.f32 %v3508_v20, %v854_v36  ;;  %v3510_v27 = vld [vmem:[#allocation16_spill] sm:$0xff]  ;;  %v3511_v28 = vld [vmem:[#allocation22_spill] sm:$0xff]  ;;  %v3513_v34 = vld [vmem:[#allocation17_spill] sm:$0xff] }
 0x137   : > { %v1080_v26 = vmul.f32 %v2592_v46, %v788_v39  ;;  %v998_v54 = vadd.f32 %v982_v31, %v949_v21  ;;  %v1095_v24 = vadd.f32 %v1079_v57, %v1045_v8  ;;  %v1128_v25 = vmul.f32 %v2581_v29, %v820_v49  ;;  %v3514_v17 = vld [vmem:[#allocation23_spill] sm:$0xff]  ;;  %v3516_v51 = vld [vmem:[#allocation18_spill] sm:$0xff]  ;;  %v3517_v36 = vld [vmem:[#allocation24_spill] sm:$0xff] }
 0x138   : > { %v999_v44 = vadd.f32 %v3509_v50, %v950_v37  ;;  %v951_v43 = vadd.f32 %v3510_v27, %v902_v13  ;;  %v952_v1 = vadd.f32 %v3511_v28, %v903_v55  ;;  %v1177_v38 = vmul.f32 %v2583_v30, %v869_v42  ;;  %v3518_v20 = vld [vmem:[#allocation25_spill] sm:$0xff] }
 0x139   : > { %v1096_v23 = vadd.f32 %v1080_v26, %v1046_v12  ;;  %v1047_v10 = vadd.f32 %v1031_v56, %v998_v54  ;;  %v1144_v46 = vadd.f32 %v1128_v25, %v1095_v24  ;;  %v1620_v39 = vmul.f32 %v1604_v14, %v2581_v29  ;;  %v3240_v12 = vld [vmem:[%s3446_s4] ss:$0 sm:$0xff] }
 0x13a   : > { %v1048_v62 = vadd.f32 %v3512_v22, %v999_v44  ;;  %v1000_v8 = vadd.f32 %v3513_v34, %v951_v43  ;;  %v1001_v49 = vadd.f32 %v3514_v17, %v952_v1  ;;  %v1668_v42 = vmul.f32 %v1652_v53, %v2583_v30  ;;  %v3520_v44 = vld [vmem:[#allocation42_spill] sm:$0xff]  ;;  %v3521_v53 = vld [vmem:[#allocation37_spill] sm:$0xff]  ;;  %v3522_v1 = vld [vmem:[#allocation43_spill] sm:$0xff] }
 0x13b   : > { %v3235_v16 = vadd.f32 %v3515_v48, %v1096_v23  ;;  %v1097_v40 = vadd.f32 %v3516_v51, %v1047_v10  ;;  %v3244_v6 = vadd.f32 %v1177_v38, %v1144_v46  ;;  %v1636_v4 = vadd.f32 %v1620_v39, %v1588_v5  ;;  %v3524_v22 = vld [vmem:[#allocation26_spill] sm:$0xff]  ;;  %v3527_v51 = vld [vmem:[#allocation27_spill] sm:$0xff] }
 0x13c   : > { %v1619_v32 = vmul.f32 %v1603_v7, %v2581_v29  ;;  %v1049_v31 = vadd.f32 %v3517_v36, %v1000_v8  ;;  %v1667_v21 = vmul.f32 %v1651_v35, %v2583_v30  ;;  %v1698_v37 = vadd.f32 %v3240_v12, %v1682_v61  ;;  %v3519_v29 = vld [vmem:[#allocation36_spill] sm:$0xff]  ;;  %v3525_v8 = vld [vmem:[#allocation45_spill] sm:$0xff] }
 0x13d   : > { %v1697_v56 = vadd.f32 %v3240_v12, %v3194_v33  ;;  %v1684_v57 = vadd.f32 %v1668_v42, %v1636_v4  ;;  %v1050_v55 = vadd.f32 %v3518_v20, %v1001_v49  ;;  %v1696_v26 = vadd.f32 %v3240_v12, %v3156_v41  ;;  %v3526_v49 = vld [vmem:[#allocation55_spill] sm:$0xff] }
 0x13e   : > { %v1635_v13 = vadd.f32 %v1619_v32, %v3192_v58  ;;  %v1714_v5 = vmax.f32 %v1698_v37, 0.0  ;;  %v1099_v54 = vadd.f32 %v3519_v29, %v1049_v31  ;;  %v1695_v30 = vadd.f32 %v3240_v12, %v3147_v59  ;;  %v3523_v59 = vld [vmem:[#allocation44_spill] sm:$0xff] }
 0x13f   : > { %v1713_v14 = vmax.f32 %v1697_v56, 0.0  ;;  %v1700_v61 = vadd.f32 %v3240_v12, %v1684_v57  ;;  %v1100_v33 = vadd.f32 %v3520_v44, %v1050_v55  ;;  %v1712_v24 = vmax.f32 %v1696_v26, 0.0  ;;  %v3531_v26 = vld [vmem:[#allocation46_spill] sm:$0xff]  ;;  %v3534_v44 = vld [vmem:[#allocation47_spill] sm:$0xff] }
 0x140   : > { %v1683_v50 = vadd.f32 %v1667_v21, %v1635_v13  ;;  %v1730_v25 = vmin.f32 %v1714_v5, 6.0  ;;  %v1148_v27 = vadd.f32 %v3521_v53, %v1099_v54  ;;  %v1711_v43 = vmax.f32 %v1695_v30, 0.0  ;;  %v3529_v21 = vld [vmem:[#allocation19_spill] sm:$0xff]  ;;  %v3530_v13 = vld [vmem:[#allocation29_spill] sm:$0xff]  ;;  %v3533_v30 = vld [vmem:[#allocation40_spill] sm:$0xff] }
 0x141   : > { %v1729_v58 = vmin.f32 %v1713_v14, 6.0  ;;  %v1716_v28 = vmax.f32 %v1700_v61, 0.0  ;;  %v1149_v23 = vadd.f32 %v3522_v1, %v1100_v33  ;;  %v1728_v38 = vmin.f32 %v1712_v24, 6.0  ;;  %v3535_v24 = vld [vmem:[#allocation32_spill] sm:$0xff]  ;;  %v3538_v1 = vld [vmem:[#allocation49_spill] sm:$0xff] }
 0x142   : > { %v1699_v41 = vadd.f32 %v3240_v12, %v1683_v50  ;;  %1746 = vst.msk [vmem:[#allocation3 + $0xe8] sm:$0xff] %vm374_vm2, %v1730_v25  ;;  %v1197_v7 = vadd.f32 %v3523_v59, %v1148_v27  ;;  %v1727_v10 = vmin.f32 %v1711_v43, 6.0  ;;  %v1098_v46 = vadd.f32 %v3524_v22, %v1048_v62  ;;  %v3528_v62 = vld [vmem:[#allocation31_spill] sm:$0xff]  ;;  %v3536_v27 = vld [vmem:[#allocation13_spill] sm:$0xff]  ;;  %v3540_v22 = vld [vmem:[#allocation48_spill] sm:$0xff] }
 0x143   : > { %v1694_v39 = vadd.f32 %v3240_v12, %v3033_v9  ;;  %v1732_v35 = vmin.f32 %v1716_v28, 6.0  ;;  %1745 = vst.msk [vmem:[#allocation3 + $0xe0] sm:$0xff] %vm374_vm2, %v1729_v58  ;;  %v1198_v17 = vadd.f32 %v3525_v8, %v1149_v23  ;;  %v1693_v48 = vadd.f32 %v3240_v12, %v3526_v49  ;;  %v3537_v28 = vld [vmem:[#allocation41_spill] sm:$0xff] }
 0x144   : > { %v1715_v34 = vmax.f32 %v1699_v41, 0.0  ;;  %1744 = vst.msk [vmem:[#allocation3 + $0xd8] sm:$0xff] %vm374_vm2, %v1728_v38  ;;  %v1216_v42 = vadd.f32 %v3240_v12, %v1197_v7  ;;  %v1147_v4 = vadd.f32 %v3527_v51, %v1098_v46  ;;  %v1531_v36 = vadd.f32 %v3528_v62, %v3087_v0  ;;  %v3532_v0 = vld [vmem:[#allocation28_spill] sm:$0xff]  ;;  %v3539_v59 = vld [vmem:[#allocation33_spill] sm:$0xff] }
 0x145   : > { %v1710_v32 = vmax.f32 %v1694_v39, 0.0  ;;  %1748 = vst.msk [vmem:[#allocation3 + $0xf8] sm:$0xff] %vm374_vm2, %v1732_v35  ;;  %v1217_v31 = vadd.f32 %v3240_v12, %v1198_v17  ;;  %v1146_v37 = vadd.f32 %v3529_v21, %v1097_v40  ;;  %v1709_v56 = vmax.f32 %v1693_v48, 0.0  ;;  %v3541_v17 = vld [vmem:[#allocation35_spill] sm:$0xff]  ;;  %v3542_v21 = vld [vmem:[#allocation21_spill] sm:$0xff] }
 0x146   : > { %v1731_v9 = vmin.f32 %v1715_v34, 6.0  ;;  %v1232_v57 = vmax.f32 %v1216_v42, 0.0  ;;  %1743 = vst.msk [vmem:[#allocation3 + $0xd0] sm:$0xff] %vm374_vm2, %v1727_v10  ;;  %v1196_v20 = vadd.f32 %v3530_v13, %v1147_v4  ;;  %v1580_v5 = vadd.f32 %v3531_v26, %v1531_v36 }
 0x147   : > { %v1726_v55 = vmin.f32 %v1710_v32, 6.0  ;;  %v1233_v14 = vmax.f32 %v1217_v31, 0.0  ;;  %v1195_v29 = vadd.f32 %v3532_v0, %v1146_v37  ;;  %v1725_v54 = vmin.f32 %v1709_v56, 6.0  ;;  %v3544_v0 = vld [vmem:[#allocation15_spill] sm:$0xff] }
 0x148   : > { %1747 = vst.msk [vmem:[#allocation3 + $0xf0] sm:$0xff] %vm374_vm2, %v1731_v9  ;;  %v1579_v61 = vadd.f32 %v3533_v30, %v3100_v45  ;;  %v1248_v50 = vmin.f32 %v1232_v57, 6.0  ;;  %v1215_v40 = vadd.f32 %v3240_v12, %v1196_v20  ;;  %v1628_v33 = vadd.f32 %v3534_v44, %v1580_v5  ;;  %v3543_v5 = vld [vmem:[#allocation34_spill] sm:$0xff] }
 0x149   : > { %1742 = vst.msk [vmem:[#allocation3 + $0xc8] sm:$0xff] %vm374_vm2, %v1726_v55  ;;  %v1578_v25 = vadd.f32 %v3535_v24, %v3090_v18  ;;  %v1249_v58 = vmin.f32 %v1233_v14, 6.0  ;;  %v1214_v53 = vadd.f32 %v3240_v12, %v1195_v29  ;;  %v1194_v43 = vadd.f32 %v3536_v27, %v3235_v16  ;;  %v1779_v44 = vld [vmem:[#allocation3 + $0xe8] sm:$0xff] }
 0x14a   : > { %1741 = vst.msk [vmem:[#allocation3 + $0xc0] sm:$0xff] %vm374_vm2, %v1725_v54  ;;  %v1627_v45 = vadd.f32 %v3537_v28, %v1579_v61  ;;  %v1231_v41 = vmax.f32 %v1215_v40, 0.0  ;;  %v1676_v23 = vadd.f32 %v3538_v1, %v1628_v33  ;;  %v1211_v38 = vadd.f32 %v3240_v12, %v3221_v3 }
 0x14b   : > { %1264 = vst.msk [vmem:[#allocation3 + $0x70] sm:$0xff] %vm374_vm2, %v1248_v50  ;;  %v1626_v18 = vadd.f32 %v3539_v59, %v1578_v25  ;;  %v1230_v7 = vmax.f32 %v1214_v53, 0.0  ;;  %v1213_v10 = vadd.f32 %v3240_v12, %v1194_v43  ;;  %v1210_v16 = vadd.f32 %v3240_v12, %v3213_v15  ;;  %v3545_v25 = vld [vmem:[#allocation53_spill] sm:$0xff] }
 0x14c   : > { %1265 = vst.msk [vmem:[#allocation3 + $0x78] sm:$0xff] %vm374_vm2, %v1249_v58  ;;  %v1675_v46 = vadd.f32 %v3540_v22, %v1627_v45  ;;  %v1781_v39 = vld [vmem:[#allocation3 + $0xf8] sm:$0xff]  ;;  %v1247_v35 = vmin.f32 %v1231_v41, 6.0  ;;  %v1692_v34 = vadd.f32 %v3240_v12, %v1676_v23  ;;  %v1227_v8 = vmax.f32 %v1211_v38, 0.0  ;;  %v3546_v41 = vld [vmem:[#allocation52_spill] sm:$0xff] }
 0x14d   : > { %v1674_v49 = vadd.f32 %v3541_v17, %v1626_v18  ;;  %2158 = vmatpush.xpose.msk.msra.mxu2 %vm374_vm2, %v1781_v39  ;;  %v1246_v3 = vmin.f32 %v1230_v7, 6.0  ;;  %v1229_v48 = vmax.f32 %v1213_v10, 0.0  ;;  %v1212_v42 = vadd.f32 %v3240_v12, %v3244_v6  ;;  %v1778_v7 = vld [vmem:[#allocation3 + $0xe0] sm:$0xff]  ;;  %v3547_v22 = vld [vmem:[#allocation51_spill] sm:$0xff]  ;;  %v3550_v17 = vld [vmem:[#allocation38_spill] sm:$0xff] }
 0x14e   : > { %v1691_v51 = vadd.f32 %v3240_v12, %v1675_v46  ;;  %1263 = vst.msk [vmem:[#allocation3 + $0x68] sm:$0xff] %vm374_vm2, %v1247_v35  ;;  %v1708_v4 = vmax.f32 %v1692_v34, 0.0  ;;  %v1243_v15 = vmin.f32 %v1227_v8, 6.0  ;;  %v1226_v62 = vmax.f32 %v1210_v16, 0.0  ;;  %v3548_v16 = vld [vmem:[#allocation50_spill] sm:$0xff]  ;;  %v3549_v34 = vld [vmem:[#allocation39_spill] sm:$0xff] }
 0x14f   : > { %v1690_v32 = vadd.f32 %v3240_v12, %v1674_v49  ;;  %1262 = vst.msk [vmem:[#allocation3 + $0x60] sm:$0xff] %vm374_vm2, %v1246_v3  ;;  %v1245_v36 = vmin.f32 %v1229_v48, 6.0  ;;  %v1228_v9 = vmax.f32 %v1212_v42, 0.0  ;;  %v1625_v37 = vadd.f32 %v3542_v21, %v3093_v19  ;;  %v1780_v56 = vld [vmem:[#allocation3 + $0xf0] sm:$0xff] }
 0x150   : > { %v1707_v31 = vmax.f32 %v1691_v51, 0.0  ;;  %v1724_v57 = vmin.f32 %v1708_v4, 6.0  ;;  %1259 = vst.msk [vmem:[#allocation3 + $0x48] sm:$0xff] %vm374_vm2, %v1243_v15  ;;  %v1242_v13 = vmin.f32 %v1226_v62, 6.0  ;;  %v1209_v20 = vadd.f32 %v3240_v12, %v3175_v11  ;;  %v1777_v62 = vld [vmem:[#allocation3 + $0xd8] sm:$0xff] }
 0x151   : > { %v1706_v6 = vmax.f32 %v1690_v32, 0.0  ;;  %2159 = vmatpush.xpose.msk.msra.mxu2 %vm374_vm2, %v1780_v56  ;;  %1261 = vst.msk [vmem:[#allocation3 + $0x58] sm:$0xff] %vm374_vm2, %v1245_v36  ;;  %v1244_v55 = vmin.f32 %v1228_v9, 6.0  ;;  %v1673_v14 = vadd.f32 %v3543_v5, %v1625_v37  ;;  %v1672_v19 = vadd.f32 %v3544_v0, %v3096_v60  ;;  %v1776_v37 = vld [vmem:[#allocation3 + $0xd0] sm:$0xff] }
 0x152   : > { %v1723_v26 = vmin.f32 %v1707_v31, 6.0  ;;  %1740 = vst.msk [vmem:[#allocation3 + $0xb8] sm:$0xff] %vm374_vm2, %v1724_v57  ;;  %v1225_v30 = vmax.f32 %v1209_v20, 0.0  ;;  %v1208_v61 = vadd.f32 %v3240_v12, %v3164_v52  ;;  %v1687_v11 = vadd.f32 %v3240_v12, %v3102_v63  ;;  %v1775_v57 = vld [vmem:[#allocation3 + $0xc8] sm:$0xff]  ;;  %v1930_v0 = vld [vmem:[%s3448_s6] sm:$0xff] }
 0x153   : > { %v1765_v29 = vld [vmem:[#allocation3 + $0x78] sm:$0xff]  ;;  %v1722_v54 = vmin.f32 %v1706_v6, 6.0  ;;  %1260 = vst.msk [vmem:[#allocation3 + $0x50] sm:$0xff] %vm374_vm2, %v1244_v55  ;;  %v1689_v50 = vadd.f32 %v3240_v12, %v1673_v14  ;;  %v1688_v40 = vadd.f32 %v3240_v12, %v1672_v19  ;;  %v1207_v60 = vadd.f32 %v3240_v12, %v3081_v47  ;;  %v1764_v47 = vld [vmem:[#allocation3 + $0x70] sm:$0xff] }
 0x154   : > { %2141 = vmatpush.xpose.msk.msrb.mxu1 %vm374_vm2, %v1765_v29  ;;  %1739 = vst.msk [vmem:[#allocation3 + $0xb0] sm:$0xff] %vm374_vm2, %v1723_v26  ;;  %v1241_v33 = vmin.f32 %v1225_v30, 6.0  ;;  %v1224_v24 = vmax.f32 %v1208_v61, 0.0  ;;  %v1703_v52 = vmax.f32 %v1687_v11, 0.0  ;;  %v1686_v63 = vadd.f32 %v3240_v12, %v3545_v25 }
 0x155   : > { %2160 = vmatpush.xpose.msk.msra.mxu2 %vm374_vm2, %v1779_v44  ;;  %1738 = vst.msk [vmem:[#allocation3 + $0xa8] sm:$0xff] %vm374_vm2, %v1722_v54  ;;  %v1705_v58 = vmax.f32 %v1689_v50, 0.0  ;;  %v1704_v53 = vmax.f32 %v1688_v40, 0.0  ;;  %v1223_v27 = vmax.f32 %v1207_v60, 0.0  ;;  %v1206_v43 = vadd.f32 %v3240_v12, %v3075_v2  ;;  %v1763_v3 = vld [vmem:[#allocation3 + $0x68] sm:$0xff] }
 0x156   : > { %1258 = vst.msk [vmem:[#allocation3 + $0x40] sm:$0xff] %vm374_vm2, %v1242_v13  ;;  %v1240_v28 = vmin.f32 %v1224_v24, 6.0  ;;  %v1702_v45 = vmax.f32 %v1686_v63, 0.0  ;;  %v1685_v1 = vadd.f32 %v3240_v12, %v3546_v41  ;;  %v1719_v59 = vmin.f32 %v1703_v52, 6.0  ;;  %v1762_v9 = vld [vmem:[#allocation3 + $0x60] sm:$0xff]  ;;  %v1749_v52 = vld [vmem:[%s3447_s5] sm:$0xff] }
 0x157   : > { %v1721_v23 = vmin.f32 %v1705_v58, 6.0  ;;  %1257 = vst.msk [vmem:[#allocation3 + $0x38] sm:$0xff] %vm374_vm2, %v1241_v33  ;;  %v1720_v38 = vmin.f32 %v1704_v53, 6.0  ;;  %v1222_v18 = vmax.f32 %v1206_v43, 0.0  ;;  %v1239_v2 = vmin.f32 %v1223_v27, 6.0  ;;  %v1774_v13 = vld [vmem:[#allocation3 + $0xc0] sm:$0xff] }
 0x158   : > { %2142 = vmatpush.xpose.msk.msrb.mxu1 %vm374_vm2, %v1764_v47  ;;  %1256 = vst.msk [vmem:[#allocation3 + $0x30] sm:$0xff] %vm374_vm2, %v1240_v28  ;;  %v1701_v10 = vmax.f32 %v1685_v1, 0.0  ;;  %v1205_v46 = vadd.f32 %v3240_v12, %v3547_v22  ;;  %v1204_v39 = vadd.f32 %v3240_v12, %v3548_v16  ;;  %v1718_v35 = vmin.f32 %v1702_v45, 6.0  ;;  %v1761_v56 = vld [vmem:[#allocation3 + $0x58] sm:$0xff]  ;;  %v1759_v20 = vld [vmem:[#allocation3 + $0x48] sm:$0xff] }
 0x159   : > { %2161 = vmatpush.xpose.msk.msra.mxu2 %vm374_vm2, %v1778_v7  ;;  %1737 = vst.msk [vmem:[#allocation3 + $0xa0] sm:$0xff] %vm374_vm2, %v1721_v23  ;;  %v1203_v8 = vadd.f32 %v3240_v12, %v3549_v34  ;;  %v1202_v49 = vadd.f32 %v3240_v12, %v3550_v17  ;;  %v1238_v48 = vmin.f32 %v1222_v18, 6.0  ;;  %v1773_v55 = vld [vmem:[#allocation3 + $0xb8] sm:$0xff]  ;;  %v2326_v19 = vmov 0  }
 0x15a   : > { %1736 = vst.msk [vmem:[#allocation3 + $0x98] sm:$0xff] %vm374_vm2, %v1720_v38  ;;  %v1221_v42 = vmax.f32 %v1205_v46, 0.0  ;;  %v1220_v51 = vmax.f32 %v1204_v39, 0.0  ;;  %v1717_v4 = vmin.f32 %v1701_v10, 6.0  ;;  %v1760_v6 = vld [vmem:[#allocation3 + $0x50] sm:$0xff]  ;;  %2241 = vset.pattern.permute.xlu0 %v2326_v19 }
 0x15b   : > { %1735 = vst.msk [vmem:[#allocation3 + $0x90] sm:$0xff] %vm374_vm2, %v1719_v59  ;;  %v1219_v15 = vmax.f32 %v1203_v8, 0.0  ;;  %v1218_v32 = vmax.f32 %v1202_v49, 0.0  ;;  %v1772_v5 = vld [vmem:[#allocation3 + $0xb0] sm:$0xff]  ;;  %1935 = vperm.xlu0 %2241, %v1930_v0  }
 0x15c   : > { %2143 = vmatpush.xpose.msk.msrb.mxu1 %vm374_vm2, %v1763_v3  ;;  %1255 = vst.msk [vmem:[#allocation3 + $0x28] sm:$0xff] %vm374_vm2, %v1239_v2  ;;  %v1237_v36 = vmin.f32 %v1221_v42, 6.0  ;;  %v1236_v12 = vmin.f32 %v1220_v51, 6.0  ;;  %v1771_v29 = vld [vmem:[#allocation3 + $0xa8] sm:$0xff] }
 0x15d   : > { %2162 = vmatpush.xpose.msk.msra.mxu2 %vm374_vm2, %v1777_v62  ;;  %1734 = vst.msk [vmem:[#allocation3 + $0x88] sm:$0xff] %vm374_vm2, %v1718_v35  ;;  %v1235_v31 = vmin.f32 %v1219_v15, 6.0  ;;  %v1234_v21 = vmin.f32 %v1218_v32, 6.0  ;;  %v1758_v26 = vld [vmem:[#allocation3 + $0x40] sm:$0xff] }
 0x15e   : > { %1254 = vst.msk [vmem:[#allocation3 + $0x20] sm:$0xff] %vm374_vm2, %v1238_v48  ;;  %v1757_v14 = vld [vmem:[#allocation3 + $0x38] sm:$0xff] }
 0x15f   : > { %1733 = vst.msk [vmem:[#allocation3 + $0x80] sm:$0xff] %vm374_vm2, %v1717_v4  ;;  %v1756_v54 = vld [vmem:[#allocation3 + $0x30] sm:$0xff] }
 0x160   : > { %2144 = vmatpush.xpose.msk.msrb.mxu1 %vm374_vm2, %v1762_v9  ;;  %1253 = vst.msk [vmem:[#allocation3 + $0x18] sm:$0xff] %vm374_vm2, %v1237_v36  ;;  %v1770_v30 = vld [vmem:[#allocation3 + $0xa0] sm:$0xff] }
 0x161   : > { %2163 = vmatpush.xpose.msk.msra.mxu2 %vm374_vm2, %v1776_v37  ;;  %1252 = vst.msk [vmem:[#allocation3 + $0x10] sm:$0xff] %vm374_vm2, %v1236_v12  ;;  %v1769_v11 = vld [vmem:[#allocation3 + $0x98] sm:$0xff] }
 0x162   : > { %1251 = vst.msk [vmem:[#allocation3 + $0x8] sm:$0xff] %vm374_vm2, %v1235_v31  ;;  %v1768_v40 = vld [vmem:[#allocation3 + $0x90] sm:$0xff] }
 0x163   : > { %1250 = vst.msk [vmem:[#allocation3] sm:$0xff] %vm374_vm2, %v1234_v21  ;;  %v1755_v61 = vld [vmem:[#allocation3 + $0x28] sm:$0xff] }
 0x164   : > { %2145 = vmatpush.xpose.msk.msrb.mxu1 %vm374_vm2, %v1761_v56  ;;  %v1767_v44 = vld [vmem:[#allocation3 + $0x88] sm:$0xff] }
 0x165   : > { %2164 = vmatpush.xpose.msk.msra.mxu2 %vm374_vm2, %v1775_v57  ;;  %v1754_v50 = vld [vmem:[#allocation3 + $0x20] sm:$0xff] }
 0x166   : > { %v1766_v24 = vld [vmem:[#allocation3 + $0x80] sm:$0xff] }
 0x167   : > { %v1753_v60 = vld [vmem:[#allocation3 + $0x18] sm:$0xff] }
 0x168   : > { %2146 = vmatpush.xpose.msk.msrb.mxu1 %vm374_vm2, %v1760_v6  ;;  %v1752_v33 = vld [vmem:[#allocation3 + $0x10] sm:$0xff] }
 0x169   : > { %2165 = vmatpush.xpose.msk.msra.mxu2 %vm374_vm2, %v1774_v13  ;;  %v1751_v25 = vld [vmem:[#allocation3 + $0x8] sm:$0xff] }
 0x16a   : > { %v1750_v63 = vld [vmem:[#allocation3] sm:$0xff] }
 0x16c   : > { %2147 = vmatpush.xpose.msk.msrb.mxu1 %vm374_vm2, %v1759_v20 }
 0x16d   : > { %2166 = vmatpush.xpose.msk.msra.mxu2 %vm374_vm2, %v1773_v55 }
 0x170   : > { %2148 = vmatpush.xpose.msk.msrb.mxu1 %vm374_vm2, %v1758_v26 }
 0x171   : > { %2167 = vmatpush.xpose.msk.msra.mxu2 %vm374_vm2, %v1772_v5 }
 0x174   : > { %2149 = vmatpush.xpose.msk.msrb.mxu1 %vm374_vm2, %v1757_v14 }
 0x175   : > { %2168 = vmatpush.xpose.msk.msra.mxu2 %vm374_vm2, %v1771_v29 }
 0x178   : > { %2150 = vmatpush.xpose.msk.msrb.mxu1 %vm374_vm2, %v1756_v54 }
 0x179   : > { %2169 = vmatpush.xpose.msk.msra.mxu2 %vm374_vm2, %v1770_v30 }
 0x17c   : > { %2151 = vmatpush.xpose.msk.msrb.mxu1 %vm374_vm2, %v1755_v61 }
 0x17d   : > { %2170 = vmatpush.xpose.msk.msra.mxu2 %vm374_vm2, %v1769_v11 }
 0x180   : > { %2152 = vmatpush.xpose.msk.msrb.mxu1 %vm374_vm2, %v1754_v50 }
 0x181   : > { %2171 = vmatpush.xpose.msk.msra.mxu2 %vm374_vm2, %v1768_v40 }
 0x184   : > { %2153 = vmatpush.xpose.msk.msrb.mxu1 %vm374_vm2, %v1753_v60 }
 0x185   : > { %2172 = vmatpush.xpose.msk.msra.mxu2 %vm374_vm2, %v1767_v44 }
 0x188   : > { %2154 = vmatpush.xpose.msk.msrb.mxu1 %vm374_vm2, %v1752_v33 }
 0x189   : > { %2173 = vmatpush.xpose.msk.msra.mxu2 %vm374_vm2, %v1766_v24 }
 0x18c   : > { %2155 = vmatpush.xpose.msk.msrb.mxu1 %vm374_vm2, %v1751_v25  ;;  %2174 = vmatmul.msk.f32.vlgmr.msra.gmra.mxu2 %vm374_vm2, %v1749_v52 }
 0x190   : > { %2156 = vmatpush.xpose.msk.msrb.mxu1 %vm374_vm2, %v1750_v63 }
 0x193   : > { %2157 = vmatmul.msk.f32.vlgmr.msrb.gmra.mxu1 %vm374_vm2, %v1749_v52 }
 0x1cd   : > { %v1936_v58 = vpop.permute.xlu0 %1935 }
 0x20f   : > { %v1918_v27 = vpop.f32.mrf.mxu2 }
 0x210   : > { %v1898_v53 = vpop.f32.mrf.mxu1  ;;  %v1939_v47 = vadd.f32 %v1936_v58, %v1918_v27 }
 0x211   : > { %v1938_v43 = vadd.f32 %v1936_v58, %v1898_v53 }
 0x212   : > { %1941 = vst [vmem:[%s344_s18 + $0x8] sm:$0xff] %v1939_v47 }
 0x213   : > { %1940 = vst [vmem:[%s344_s18] sm:$0xff] %v1938_v43 }
 0x214   : > { %2272 = shalt.err (!%p2269_p5)
}
 0x215   : > { %2184 = dma.vmem_to_hbm [thread:$0]  (%p2407_p4), %s1957_s19, 256, %s1959_s20, %s1943_s21  }
 0x216 PF: > { %p2190_p6 = scmp.ge.s32.totalorder %s2323_s29, 2  ;;  %s1970_s8 = sand.u32 1, %s2303_s24  }
 0x217   : > { %s1971_s16 = scalar_lea.sflag [#allocation6], %s1970_s8 }
 0x218   : > { %p2187_p7 = pnand %p2190_p6, %p2414_p8 }
 0x21a   : > { %p2188_p9 = pneg %p2187_p7 }
 0x21c   : > { %2298 = dma.done.wait (%p2188_p9), %s1971_s16, 256  }
 0x21d   : > { %2300 = vsyncadd (%p2188_p9), %s1971_s16, 4294967040  ;;  %s20_s29 = sadd.s32 1, %s2323_s29   ;;  %s3551_s24 = smov %s2307_s25 }
 0x21e   : > { %p17_p10 = scmp.ge.s32.totalorder %s20_s29, 4   ;;  %s3552_s25 = smov %s2311_s26 }
 0x21f   : > { %s3553_s26 = smov %s2420_s14  ;;  %s3554_s27 = smov %s2319_s28 }
 0x220   : > { %s3555_s28 = smov %s3557_s9  ;;  %19 = sbr.rel (!%p17_p10) target bundleno = 4 (0x4), region = 112 }
 0x225   :  { %1977 = vsyncpa [#allocation6], 1 }
 0x226   :  { %1979 = vsyncpa [#allocation6 + $0x1], 1 }

</bundles_post_ra>
